<compile_context>
chip_gen: v7x
topology: tpu7x:2x2x1
jax: 0.10.0
libtpu: 0.0.40
codegen_flags: <defaults>
</compile_context>

<pallas_src>
import functools

import jax
import jax.numpy as jnp
from jax.experimental import pallas as pl
from jax.experimental.pallas import tpu as pltpu

EMBEDDING_DIM = 50          # decoder input (latent) width
HIDDEN_LAYER_1 = 50
HIDDEN_LAYER_2 = 50
IMG_DIM = 28 * 28           # 784
DEFAULT_TB = 512            # batch tile (MXU M dimension / HBM writeback chunk)


# ---------------------------------------------------------------------------
# Kernel
# ---------------------------------------------------------------------------
def _decoder_kernel(x_ref, w1_ref, b1_ref, w2_ref, b2_ref, w3_ref, b3_ref,
                    out_ref):
    # x_ref: (TB, 50) f32; weights bf16 (VMEM-resident); biases f32.
    x = x_ref[...].astype(jnp.bfloat16)           # in-kernel cast (VPU filler)

    h1 = jnp.tanh(
        jnp.dot(x, w1_ref[...], preferred_element_type=jnp.float32)
        + b1_ref[...]
    )
    h2 = jnp.tanh(
        jnp.dot(h1.astype(jnp.bfloat16), w2_ref[...],
                preferred_element_type=jnp.float32)
        + b2_ref[...]
    )
    out = (
        jnp.dot(h2.astype(jnp.bfloat16), w3_ref[...],
                preferred_element_type=jnp.float32)
        + b3_ref[...]
    )
    out_ref[...] = out.astype(out_ref.dtype)


# ---------------------------------------------------------------------------
# Wrapper
# ---------------------------------------------------------------------------
@functools.partial(jax.jit, static_argnames=("tb", "out_dtype"))
def decoder_forward(x, prep, *, tb=DEFAULT_TB, out_dtype=jnp.float32):
    """x: [B, 50] f32.  prep: output of prepare_params().  Returns [B, 784]."""
    B = x.shape[0]

    # Effective batch tile: never larger than B (small batches -> one full
    # block), and a multiple of 8 (sublane) whenever it actually tiles B.
    if tb >= B:
        tb_eff = B
    else:
        tb_eff = max(8, (tb // 8) * 8)
    n_blocks = pl.cdiv(B, tb_eff)

    w1, b1, w2, b2, w3, b3 = (prep["w1"], prep["b1"], prep["w2"], prep["b2"],
                              prep["w3"], prep["b3"])

    in_specs = [
        pl.BlockSpec((tb_eff, EMBEDDING_DIM), lambda i: (i, 0)),          # x
        pl.BlockSpec((EMBEDDING_DIM, HIDDEN_LAYER_2), lambda i: (0, 0)),  # w1
        pl.BlockSpec((1, HIDDEN_LAYER_2), lambda i: (0, 0)),              # b1
        pl.BlockSpec((HIDDEN_LAYER_2, HIDDEN_LAYER_1), lambda i: (0, 0)), # w2
        pl.BlockSpec((1, HIDDEN_LAYER_1), lambda i: (0, 0)),              # b2
        pl.BlockSpec((HIDDEN_LAYER_1, IMG_DIM), lambda i: (0, 0)),        # w3
        pl.BlockSpec((1, IMG_DIM), lambda i: (0, 0)),                     # b3
    ]
    out_spec = pl.BlockSpec((tb_eff, IMG_DIM), lambda i: (i, 0))

    # Exact output shape: no post-hoc out[:B] slice pass; a ragged final
    # block is masked by Pallas at the boundary.
    return pl.pallas_call(
        _decoder_kernel,
        out_shape=jax.ShapeDtypeStruct((B, IMG_DIM), out_dtype),
        grid=(n_blocks,),
        in_specs=in_specs,
        out_specs=out_spec,
        compiler_params=pltpu.CompilerParams(
            dimension_semantics=("parallel",),   # batch blocks across TCs (v7x)
        ),
    )(x, w1, b1, w2, b2, w3, b3)


# ---------------------------------------------------------------------------
# Parameter init (mimics torch.nn.Linear defaults) + one-time prep
# ---------------------------------------------------------------------------
def _linear_init(key, fan_in, fan_out):
    """U(-1/sqrt(fan_in), 1/sqrt(fan_in)); W stored as [in, out] for x @ W."""
    kw, kb = jax.random.split(key)
    bound = 1.0 / jnp.sqrt(jnp.float32(fan_in))
    w = jax.random.uniform(kw, (fan_in, fan_out), jnp.float32, -bound, bound)
    b = jax.random.uniform(kb, (1, fan_out), jnp.float32, -bound, bound)
    return w, b


def init_params(key):
    k1, k2, k3 = jax.random.split(key, 3)
    p = {}
    p["w1"], p["b1"] = _linear_init(k1, EMBEDDING_DIM, HIDDEN_LAYER_2)   # 50 -> 50
    p["w2"], p["b2"] = _linear_init(k2, HIDDEN_LAYER_2, HIDDEN_LAYER_1)  # 50 -> 50
    p["w3"], p["b3"] = _linear_init(k3, HIDDEN_LAYER_1, IMG_DIM)         # 50 -> 784
    return p


def prepare_params(params):
    """One-time: cast weights to bf16 for the MXU (biases stay f32)."""
    return {
        "w1": params["w1"].astype(jnp.bfloat16),
        "b1": params["b1"],
        "w2": params["w2"].astype(jnp.bfloat16),
        "b2": params["b2"],
        "w3": params["w3"].astype(jnp.bfloat16),
        "b3": params["b3"],
    }


# ---------------------------------------------------------------------------
# Reference (pure JAX, f32) — matches the PyTorch Decoder.forward
# ---------------------------------------------------------------------------
def _reference_forward(x, p):
    h1 = jnp.tanh(x @ p["w1"] + p["b1"])
    h2 = jnp.tanh(h1 @ p["w2"] + p["b2"])
    return h2 @ p["w3"] + p["b3"]


if __name__ == "__main__":
    key = jax.random.PRNGKey(0)
    k_params, k_x = jax.random.split(key)

    params = init_params(k_params)
    prep = prepare_params(params)

    # Main check: small batch -> default tb clamps to B (single full block).
    B = 256
    x = jax.random.normal(k_x, (B, EMBEDDING_DIM), jnp.float32)
    out = jax.block_until_ready(decoder_forward(x, prep))
    ref = _reference_forward(x, params)
    assert out.shape == (B, IMG_DIM), out.shape
    # bf16 MXU inputs with f32 accumulation vs. f32 reference -> loose tolerance.
    assert jnp.allclose(out, ref, atol=5e-2, rtol=5e-2), (
        "mismatch vs reference: max abs err = "
        f"{float(jnp.max(jnp.abs(out - ref)))}"
    )

    # Boundary check: multi-block grid with a ragged final block (exact
    # out_shape, masked boundary stores — validates the no-slice path).
    B2 = 200
    x2 = jax.random.normal(jax.random.PRNGKey(1), (B2, EMBEDDING_DIM),
                           jnp.float32)
    out2 = jax.block_until_ready(decoder_forward(x2, prep, tb=64))
    ref2 = _reference_forward(x2, params)
    assert out2.shape == (B2, IMG_DIM), out2.shape
    assert jnp.allclose(out2, ref2, atol=5e-2, rtol=5e-2), (
        "ragged-batch mismatch: max abs err = "
        f"{float(jnp.max(jnp.abs(out2 - ref2)))}"
    )

    print("KERNEL_OK")
</pallas_src>

<mosaic_0001>
module attributes {stable_mosaic.version = 11 : i64} {
  func.func @_decoder_kernel(%arg0: i32, %arg1: memref<256x50xf32, #tpu.memory_space<vmem>>, %arg2: memref<50x50xbf16, #tpu.memory_space<vmem>>, %arg3: memref<1x50xf32, #tpu.memory_space<vmem>>, %arg4: memref<50x50xbf16, #tpu.memory_space<vmem>>, %arg5: memref<1x50xf32, #tpu.memory_space<vmem>>, %arg6: memref<50x784xbf16, #tpu.memory_space<vmem>>, %arg7: memref<1x784xf32, #tpu.memory_space<vmem>>, %arg8: memref<256x784xf32, #tpu.memory_space<vmem>>) attributes {dimension_semantics = [#tpu.dimension_semantics<parallel>], iteration_bounds = array<i64: 1>, scalar_prefetch = 0 : i64, scratch_operands = 0 : i64, tpu.core_type = #tpu.core_type<tc>, window_params = [{transform_indices = @transform_0, window_bounds = array<i64: 256, 50>}, {pipeline_mode = #tpu.pipeline_mode<synchronous>, transform_indices = @transform_1, window_bounds = array<i64: 50, 50>}, {pipeline_mode = #tpu.pipeline_mode<synchronous>, transform_indices = @transform_2, window_bounds = array<i64: 1, 50>}, {pipeline_mode = #tpu.pipeline_mode<synchronous>, transform_indices = @transform_3, window_bounds = array<i64: 50, 50>}, {pipeline_mode = #tpu.pipeline_mode<synchronous>, transform_indices = @transform_4, window_bounds = array<i64: 1, 50>}, {pipeline_mode = #tpu.pipeline_mode<synchronous>, transform_indices = @transform_5, window_bounds = array<i64: 50, 784>}, {pipeline_mode = #tpu.pipeline_mode<synchronous>, transform_indices = @transform_6, window_bounds = array<i64: 1, 784>}, {transform_indices = @transform_7, window_bounds = array<i64: 256, 784>}]} {
    %c0 = arith.constant 0 : index
    %c0_0 = arith.constant 0 : index
    %0 = vector.load %arg1[%c0, %c0_0] : memref<256x50xf32, #tpu.memory_space<vmem>>, vector<256x50xf32>
    %1 = arith.truncf %0 : vector<256x50xf32> to vector<256x50xbf16>
    %c0_1 = arith.constant 0 : index
    %c0_2 = arith.constant 0 : index
    %2 = vector.load %arg2[%c0_1, %c0_2] : memref<50x50xbf16, #tpu.memory_space<vmem>>, vector<50x50xbf16>
    %cst = arith.constant dense<0.000000e+00> : vector<256x50xf32>
    %3 = tpu.matmul %1, %2, %cst {dimension_numbers = #tpu.dot_dimension_numbers<[1], [0], [0], [1], [0, 0, 1, 1], [], []>} : vector<256x50xbf16>, vector<50x50xbf16>, vector<256x50xf32> -> vector<256x50xf32>
    %c0_3 = arith.constant 0 : index
    %c0_4 = arith.constant 0 : index
    %4 = vector.load %arg3[%c0_3, %c0_4] : memref<1x50xf32, #tpu.memory_space<vmem>>, vector<1x50xf32>
    %5 = vector.broadcast %4 : vector<1x50xf32> to vector<256x50xf32>
    %6 = arith.addf %3, %5 : vector<256x50xf32>
    %7 = math.tanh %6 : vector<256x50xf32>
    %8 = arith.truncf %7 : vector<256x50xf32> to vector<256x50xbf16>
    %c0_5 = arith.constant 0 : index
    %c0_6 = arith.constant 0 : index
    %9 = vector.load %arg4[%c0_5, %c0_6] : memref<50x50xbf16, #tpu.memory_space<vmem>>, vector<50x50xbf16>
    %cst_7 = arith.constant dense<0.000000e+00> : vector<256x50xf32>
    %10 = tpu.matmul %8, %9, %cst_7 {dimension_numbers = #tpu.dot_dimension_numbers<[1], [0], [0], [1], [0, 0, 1, 1], [], []>} : vector<256x50xbf16>, vector<50x50xbf16>, vector<256x50xf32> -> vector<256x50xf32>
    %c0_8 = arith.constant 0 : index
    %c0_9 = arith.constant 0 : index
    %11 = vector.load %arg5[%c0_8, %c0_9] : memref<1x50xf32, #tpu.memory_space<vmem>>, vector<1x50xf32>
    %12 = vector.broadcast %11 : vector<1x50xf32> to vector<256x50xf32>
    %13 = arith.addf %10, %12 : vector<256x50xf32>
    %14 = math.tanh %13 : vector<256x50xf32>
    %15 = arith.truncf %14 : vector<256x50xf32> to vector<256x50xbf16>
    %c0_10 = arith.constant 0 : index
    %c0_11 = arith.constant 0 : index
    %16 = vector.load %arg6[%c0_10, %c0_11] : memref<50x784xbf16, #tpu.memory_space<vmem>>, vector<50x784xbf16>
    %cst_12 = arith.constant dense<0.000000e+00> : vector<256x784xf32>
    %17 = tpu.matmul %15, %16, %cst_12 {dimension_numbers = #tpu.dot_dimension_numbers<[1], [0], [0], [1], [0, 0, 1, 1], [], []>} : vector<256x50xbf16>, vector<50x784xbf16>, vector<256x784xf32> -> vector<256x784xf32>
    %c0_13 = arith.constant 0 : index
    %c0_14 = arith.constant 0 : index
    %18 = vector.load %arg7[%c0_13, %c0_14] : memref<1x784xf32, #tpu.memory_space<vmem>>, vector<1x784xf32>
    %19 = vector.broadcast %18 : vector<1x784xf32> to vector<256x784xf32>
    %20 = arith.addf %17, %19 : vector<256x784xf32>
    %c0_15 = arith.constant 0 : index
    %c0_16 = arith.constant 0 : index
    %21 = vector.load %arg8[%c0_15, %c0_16] : memref<256x784xf32, #tpu.memory_space<vmem>>, vector<256x784xf32>
    tpu.vector_store %arg8[%c0_15, %c0_16], %20 {strides = array<i32>} : memref<256x784xf32, #tpu.memory_space<vmem>>, vector<256x784xf32>,
    return
  }
  func.func @transform_0(%arg0: i32) -> (i32, i32) {
    %c0_i32 = arith.constant 0 : i32
    %c0_i32_0 = arith.constant 0 : i32
    return %arg0, %c0_i32 : i32, i32
  }
  func.func @transform_1(%arg0: i32) -> (i32, i32) {
    %c0_i32 = arith.constant 0 : i32
    %c0_i32_0 = arith.constant 0 : i32
    %c0_i32_1 = arith.constant 0 : i32
    return %c0_i32, %c0_i32_0 : i32, i32
  }
  func.func @transform_2(%arg0: i32) -> (i32, i32) {
    %c0_i32 = arith.constant 0 : i32
    %c0_i32_0 = arith.constant 0 : i32
    %c0_i32_1 = arith.constant 0 : i32
    return %c0_i32, %c0_i32_0 : i32, i32
  }
  func.func @transform_3(%arg0: i32) -> (i32, i32) {
    %c0_i32 = arith.constant 0 : i32
    %c0_i32_0 = arith.constant 0 : i32
    %c0_i32_1 = arith.constant 0 : i32
    return %c0_i32, %c0_i32_0 : i32, i32
  }
  func.func @transform_4(%arg0: i32) -> (i32, i32) {
    %c0_i32 = arith.constant 0 : i32
    %c0_i32_0 = arith.constant 0 : i32
    %c0_i32_1 = arith.constant 0 : i32
    return %c0_i32, %c0_i32_0 : i32, i32
  }
  func.func @transform_5(%arg0: i32) -> (i32, i32) {
    %c0_i32 = arith.constant 0 : i32
    %c0_i32_0 = arith.constant 0 : i32
    %c0_i32_1 = arith.constant 0 : i32
    return %c0_i32, %c0_i32_0 : i32, i32
  }
  func.func @transform_6(%arg0: i32) -> (i32, i32) {
    %c0_i32 = arith.constant 0 : i32
    %c0_i32_0 = arith.constant 0 : i32
    %c0_i32_1 = arith.constant 0 : i32
    return %c0_i32, %c0_i32_0 : i32, i32
  }
  func.func @transform_7(%arg0: i32) -> (i32, i32) {
    %c0_i32 = arith.constant 0 : i32
    %c0_i32_0 = arith.constant 0 : i32
    return %arg0, %c0_i32 : i32, i32
  }
}

</mosaic_0001>

<bundles_post_ra>
// kernel: decoder_forward.1
= control target key start
LH: loop header
LB: loop body
LE: loop exit
PB: predicated region body
PF: predicated region fallthrough
CT: control target
= control target key end

     0   :  { %vm110_vm0 = vcmask 408576   ;;  %vm159_vm1 = vcmask 1040384   ;;  %vm1673_vm2 = vcmask 130048   ;;  %s3946_s1 = inlined_call_operand.vmem [shape: bf16[50,50], index: 1, kind: input, shape index: {}]   ;;  %s3947_s0 = inlined_call_operand.vmem [shape: f32[256,50], index: 0, kind: input, shape index: {}]   ;;  %s3948_s3 = inlined_call_operand.vmem [shape: bf16[50,50], index: 3, kind: input, shape index: {}]   ;;  %s3949_s5 = inlined_call_operand.vmem [shape: bf16[50,784], index: 5, kind: input, shape index: {}]   ;;  %s3950_s2 = inlined_call_operand.vmem [shape: f32[1,50], index: 2, kind: input, shape index: {}]   ;;  %s3951_s4 = inlined_call_operand.vmem [shape: f32[1,50], index: 4, kind: input, shape index: {}]   ;;  %s3952_s6 = inlined_call_operand.vmem [shape: f32[1,784], index: 6, kind: input, shape index: {}]   ;;  %s3953_s7 = inlined_call_operand.vmem [shape: f32[256,784], index: 7, kind: output, shape index: {}]  }
   0x1   :  { %v2226_v0 = vld [vmem:[%s3946_s1] sm:$0xff]   ;;  %v2227_v1 = vld [vmem:[%s3946_s1 + $0x8] sm:$0xff]   ;;  %v2228_v3 = vld [vmem:[%s3946_s1 + $0x10] sm:$0xff]  }
   0x2   :  { %2093 = vmatprep.subr.bf16.mxu0 %v2226_v0  ;;  %2213 = vmatprep.subr.bf16.mxu1 %v2226_v0  ;;  %v27_v2 = vld [vmem:[%s3947_s0] sm:$0xff]  ;;  %v28_v4 = vld [vmem:[%s3947_s0 + $0x8] sm:$0xff]  ;;  %v2229_v6 = vld [vmem:[%s3946_s1 + $0x18] ss:$0 sps:$4 sm:$0x11]  }
   0x3   :  { %2094 = vmatpush3.bf16.msra.mxu0 %v2226_v0  ;;  %2217 = vmatpush3.bf16.msra.mxu1 %v2226_v0  ;;  %v59_v5 = vpack.c.bf16 %v28_v4, %v27_v2  ;;  %v43_v7 = vld [vmem:[%s3947_s0 + $0x80] sm:$0xff]  ;;  %v44_v8 = vld [vmem:[%s3947_s0 + $0x88] sm:$0xff]  ;;  %v29_v10 = vld [vmem:[%s3947_s0 + $0x10] sm:$0xff]  ;;  %v161_v13 = vsel %vm159_vm1, %v2229_v6, 0 }
   0x4   :  { %2095 = vmatprep.subr.bf16.mxu0 %v2227_v1  ;;  %2214 = vmatprep.subr.bf16.mxu1 %v2227_v1  ;;  %v67_v9 = vpack.c.bf16 %v44_v8, %v43_v7  ;;  %v30_v11 = vld [vmem:[%s3947_s0 + $0x18] sm:$0xff]  ;;  %v31_v12 = vld [vmem:[%s3947_s0 + $0x20] sm:$0xff]  ;;  %v32_v14 = vld [vmem:[%s3947_s0 + $0x28] sm:$0xff] }
   0x5   :  { %2101 = vmatprep.mubr.msk.bf16.mxu0 %vm110_vm0, %v59_v5  ;;  %v45_v15 = vld [vmem:[%s3947_s0 + $0x90] sm:$0xff]  ;;  %v46_v16 = vld [vmem:[%s3947_s0 + $0x98] sm:$0xff]  ;;  %v47_v17 = vld [vmem:[%s3947_s0 + $0xa0] sm:$0xff]  ;;  %v60_v19 = vpack.c.bf16 %v30_v11, %v29_v10  ;;  %v61_v20 = vpack.c.bf16 %v32_v14, %v31_v12 }
   0x6   :  { %2117 = vmatprep.mubr.msk.bf16.mxu1 %vm110_vm0, %v67_v9  ;;  %v48_v18 = vld [vmem:[%s3947_s0 + $0xa8] sm:$0xff]  ;;  %v68_v21 = vpack.c.bf16 %v46_v16, %v45_v15  ;;  %v2230_v22 = vld [vmem:[%s3948_s3] sm:$0xff]   ;;  %v33_v25 = vld [vmem:[%s3947_s0 + $0x30] sm:$0xff] }
   0x7   :  { %2096 = vmatpush3.bf16.msra.mxu0 %v2227_v1  ;;  %2218 = vmatpush3.bf16.msra.mxu1 %v2227_v1  ;;  %v69_v23 = vpack.c.bf16 %v48_v18, %v47_v17  ;;  %v2231_v24 = vld [vmem:[%s3948_s3 + $0x8] sm:$0xff]   ;;  %v34_v26 = vld [vmem:[%s3947_s0 + $0x38] sm:$0xff]  ;;  %v35_v27 = vld [vmem:[%s3947_s0 + $0x40] sm:$0xff] }
   0x8   :  { %2097 = vmatprep.subr.bf16.mxu0 %v2228_v3  ;;  %2215 = vmatprep.subr.bf16.mxu1 %v2228_v3  ;;  %v36_v28 = vld [vmem:[%s3947_s0 + $0x48] sm:$0xff]  ;;  %v49_v29 = vld [vmem:[%s3947_s0 + $0xb0] sm:$0xff]  ;;  %v50_v30 = vld [vmem:[%s3947_s0 + $0xb8] sm:$0xff]  ;;  %v62_v33 = vpack.c.bf16 %v34_v26, %v33_v25 }
   0x9   :  { %v51_v31 = vld [vmem:[%s3947_s0 + $0xc0] sm:$0xff]  ;;  %v52_v32 = vld [vmem:[%s3947_s0 + $0xc8] sm:$0xff]  ;;  %v63_v34 = vpack.c.bf16 %v36_v28, %v35_v27  ;;  %v70_v35 = vpack.c.bf16 %v50_v30, %v49_v29  ;;  %v37_v37 = vld [vmem:[%s3947_s0 + $0x50] sm:$0xff] }
   0xa   :  { %v71_v36 = vpack.c.bf16 %v52_v32, %v51_v31  ;;  %v38_v38 = vld [vmem:[%s3947_s0 + $0x58] sm:$0xff]  ;;  %v39_v39 = vld [vmem:[%s3947_s0 + $0x60] sm:$0xff]  ;;  %v40_v40 = vld [vmem:[%s3947_s0 + $0x68] sm:$0xff] }
   0xb   :  { %2098 = vmatpush3.bf16.msra.mxu0 %v2228_v3  ;;  %2219 = vmatpush3.bf16.msra.mxu1 %v2228_v3  ;;  %v53_v41 = vld [vmem:[%s3947_s0 + $0xd0] sm:$0xff]  ;;  %v54_v42 = vld [vmem:[%s3947_s0 + $0xd8] sm:$0xff]  ;;  %v55_v43 = vld [vmem:[%s3947_s0 + $0xe0] sm:$0xff]  ;;  %v64_v45 = vpack.c.bf16 %v38_v38, %v37_v37  ;;  %v65_v46 = vpack.c.bf16 %v40_v40, %v39_v39 }
   0xc   :  { %2221 = vmatprep.subr.msk.bf16.mxu0 %vm159_vm1, %v2229_v6  ;;  %2222 = vmatprep.subr.msk.bf16.mxu1 %vm159_vm1, %v2229_v6  ;;  %v56_v44 = vld [vmem:[%s3947_s0 + $0xe8] sm:$0xff]  ;;  %v72_v47 = vpack.c.bf16 %v54_v42, %v53_v41  ;;  %v41_v49 = vld [vmem:[%s3947_s0 + $0x70] sm:$0xff]  ;;  %v42_v50 = vld [vmem:[%s3947_s0 + $0x78] sm:$0xff] }
   0xd   :  { %v73_v48 = vpack.c.bf16 %v56_v44, %v55_v43  ;;  %v57_v51 = vld [vmem:[%s3947_s0 + $0xf0] sm:$0xff]  ;;  %v58_v52 = vld [vmem:[%s3947_s0 + $0xf8] sm:$0xff]  ;;  %v66_v53 = vpack.c.bf16 %v42_v50, %v41_v49  ;;  %v2236_v59 = vld [vmem:[%s3949_s5 + $0x4] ss:$28 sps:$4 sm:$0xff]  }
   0xe   :  { %v74_v54 = vpack.c.bf16 %v58_v52, %v57_v51  ;;  %v2232_v55 = vld [vmem:[%s3948_s3 + $0x10] sm:$0xff]   ;;  %v2233_v56 = vld [vmem:[%s3948_s3 + $0x18] ss:$0 sps:$4 sm:$0x11]   ;;  %v2234_v58 = vld [vmem:[%s3949_s5] ss:$28 sps:$4 sm:$0xff]  }
   0xf   :  { %2100 = vmatpush3.bf16.msra.mxu0 %v161_v13  ;;  %2220 = vmatpush3.bf16.msra.mxu1 %v161_v13  ;;  %v456_v57 = vsel %vm159_vm1, %v2233_v56, 0  ;;  %v2237_v60 = vld [vmem:[%s3949_s5 + $0x38] ss:$28 sps:$4 sm:$0xff]   ;;  %v2596_v62 = vld [vmem:[%s3950_s2] ss:$0 sm:$0xff] }
  0x10   :  { %2133 = vmatprep.subr.bf16.mxu1 %v2230_v22  ;;  %v2239_v61 = vld [vmem:[%s3949_s5 + $0x3c] ss:$28 sps:$4 sm:$0xff]   ;;  %927 = vmatprep.subr.bf16.mxu0 %v2236_v59 }
  0x12   :  { %2102 = vmatmul.mubr.msk.bf16.vlgmr.msra.gmra.mrb[0].mxu0 %vm110_vm0, %v60_v19  ;;  %2118 = vmatmul.mubr.msk.bf16.vlgmr.msra.gmra.mrb[0].mxu1 %vm110_vm0, %v68_v21 }
  0x13   :  { %2105 = vmatprep.mubr.msk.bf16.mxu0 %vm110_vm0, %v61_v20  ;;  %2121 = vmatprep.mubr.msk.bf16.mxu1 %vm110_vm0, %v69_v23 }
  0x14   :  { %2134 = vmatpush3.bf16.msra.mxu1 %v2230_v22  ;;  %928 = vmatpush1.bf16.msra.mxu0 %v2234_v58 }
  0x15   :  { %2135 = vmatprep.subr.bf16.mxu1 %v2231_v24  ;;  %929 = vmatprep.subr.bf16.mxu0 %v2239_v61 }
  0x18   :  { %2136 = vmatpush3.bf16.msra.mxu1 %v2231_v24  ;;  %930 = vmatpush1.bf16.msra.mxu0 %v2237_v60 }
  0x19   :  { %2137 = vmatprep.subr.bf16.mxu1 %v2232_v55 }
  0x1a   :  { %2106 = vmatmul.mubr.msk.bf16.gmra.mrb[4].mxu0 %vm110_vm0, %v62_v33  ;;  %2122 = vmatmul.mubr.msk.bf16.gmra.mrb[4].mxu1 %vm110_vm0, %v70_v35 }
  0x1b   :  { %2109 = vmatprep.mubr.msk.bf16.mxu0 %vm110_vm0, %v63_v34  ;;  %2125 = vmatprep.mubr.msk.bf16.mxu1 %vm110_vm0, %v71_v36 }
  0x1c   :  { %2138 = vmatpush3.bf16.msra.mxu1 %v2232_v55 }
  0x1d   :  { %2223 = vmatprep.subr.msk.bf16.mxu1 %vm159_vm1, %v2233_v56 }
  0x20   :  { %2140 = vmatpush3.bf16.msra.mxu1 %v456_v57 }
  0x22   :  { %2110 = vmatmul.mubr.msk.bf16.gmra.mrb[8].mxu0 %vm110_vm0, %v64_v45  ;;  %2126 = vmatmul.mubr.msk.bf16.gmra.mrb[8].mxu1 %vm110_vm0, %v72_v47 }
  0x23   :  { %2113 = vmatprep.mubr.msk.bf16.mxu0 %vm110_vm0, %v65_v46  ;;  %2129 = vmatprep.mubr.msk.bf16.mxu1 %vm110_vm0, %v73_v48 }
  0x2a   :  { %2114 = vmatmul.mubr.msk.bf16.gmra.mrb[12].mxu0 %vm110_vm0, %v66_v53  ;;  %2130 = vmatmul.mubr.msk.bf16.gmra.mrb[12].mxu1 %vm110_vm0, %v74_v54 }
  0xe5   :  { %v2103_v63 = vpop.f32.mrb[0].mxu0  ;;  %v2119_v2 = vpop.f32.mrb[0].mxu1 }
  0xe6   :  { %v206_v0 = vadd.f32 %v2103_v63, %v2596_v62  ;;  %v197_v1 = vpop.f32.mrb[1].mxu0  ;;  %v261_v5 = vpop.f32.mrb[1].mxu1  ;;  %v270_v8 = vadd.f32 %v2119_v2, %v2596_v62 }
  0xe7   :  { %v198_v3 = vadd.f32 %v2596_v62, %v197_v1  ;;  %v2104_v4 = vpop.f32.mrb[2].mxu0  ;;  %v2120_v9 = vpop.f32.mrb[2].mxu1  ;;  %v262_v11 = vadd.f32 %v2596_v62, %v261_v5 }
  0xe8   :  { %2271 = vtanh.f32 %v206_v0  ;;  %v209_v6 = vadd.f32 %v2104_v4, %v2596_v62  ;;  %v200_v7 = vpop.f32.mrb[3].mxu0  ;;  %v264_v12 = vpop.f32.mrb[3].mxu1  ;;  %v273_v13 = vadd.f32 %v2120_v9, %v2596_v62 }
  0xe9   :  { %2273 = vtanh.f32 %v198_v3  ;;  %v201_v10 = vadd.f32 %v2596_v62, %v200_v7  ;;  %v265_v14 = vadd.f32 %v2596_v62, %v264_v12 }
  0xea   :  { %2275 = vtanh.f32 %v209_v6 }
  0xeb   :  { %2277 = vtanh.f32 %v201_v10 }
  0xec   :  { %2279 = vtanh.f32 %v270_v8 }
  0xed   :  { %v2107_v15 = vpop.f32.mrb[4].mxu0  ;;  %2281 = vtanh.f32 %v262_v11  ;;  %v2123_v18 = vpop.f32.mrb[4].mxu1 }
  0xee   :  { %v222_v16 = vadd.f32 %v2107_v15, %v2596_v62  ;;  %v213_v17 = vpop.f32.mrb[5].mxu0  ;;  %2283 = vtanh.f32 %v273_v13  ;;  %v277_v21 = vpop.f32.mrb[5].mxu1  ;;  %v286_v24 = vadd.f32 %v2123_v18, %v2596_v62 }
  0xef   :  { %v214_v19 = vadd.f32 %v2596_v62, %v213_v17  ;;  %v2108_v20 = vpop.f32.mrb[6].mxu0  ;;  %2285 = vtanh.f32 %v265_v14  ;;  %v2124_v25 = vpop.f32.mrb[6].mxu1  ;;  %v278_v27 = vadd.f32 %v2596_v62, %v277_v21 }
  0xf0   :  { %2287 = vtanh.f32 %v222_v16  ;;  %v225_v22 = vadd.f32 %v2108_v20, %v2596_v62  ;;  %v216_v23 = vpop.f32.mrb[7].mxu0  ;;  %v280_v28 = vpop.f32.mrb[7].mxu1  ;;  %v289_v30 = vadd.f32 %v2124_v25, %v2596_v62 }
  0xf1   :  { %2289 = vtanh.f32 %v214_v19  ;;  %v217_v26 = vadd.f32 %v2596_v62, %v216_v23  ;;  %v281_v32 = vadd.f32 %v2596_v62, %v280_v28 }
  0xf2   :  { %v2272_v29 = vpop.eup %2271  ;;  %2291 = vtanh.f32 %v225_v22 }
  0xf3   :  { %v2274_v31 = vpop.eup %2273  ;;  %2293 = vtanh.f32 %v217_v26 }
  0xf4   :  { %v2276_v33 = vpop.eup %2275  ;;  %2295 = vtanh.f32 %v286_v24 }
  0xf5   :  { %v2278_v34 = vpop.eup %2277  ;;  %v357_v35 = vpack.c.bf16 %v2276_v33, %v2272_v29  ;;  %v2111_v36 = vpop.f32.mrb[8].mxu0  ;;  %2297 = vtanh.f32 %v278_v27 }
  0xf6   :  { %v2614_v37 = vpop.eup %2279  ;;  %v356_v38 = vpack.c.bf16 %v2278_v34, %v2274_v31  ;;  %v238_v39 = vadd.f32 %v2111_v36, %v2596_v62  ;;  %v229_v40 = vpop.f32.mrb[9].mxu0  ;;  %2299 = vtanh.f32 %v289_v30 }
  0xf7   :  { %v2127_v41 = vpop.f32.mrb[8].mxu1  ;;  %v2617_v42 = vpop.eup %2281  ;;  %v230_v43 = vadd.f32 %v2596_v62, %v229_v40  ;;  %2301 = vtanh.f32 %v281_v32 }
  0xf8   :  { %v2112_v44 = vpop.f32.mrb[10].mxu0  ;;  %v293_v45 = vpop.f32.mrb[9].mxu1  ;;  %2141 = vmatprep.mubr.msk.bf16.mxu1 %vm110_vm0, %v356_v38  ;;  %2303 = vtanh.f32 %v238_v39  ;;  %v302_v49 = vadd.f32 %v2127_v41, %v2596_v62 }
  0xf9   :  { %v2620_v46 = vpop.eup %2283  ;;  %v241_v47 = vadd.f32 %v2112_v44, %v2596_v62  ;;  %v232_v48 = vpop.f32.mrb[11].mxu0  ;;  %2142 = vmatmul.mubr.msk.bf16.vlgmr.msra.gmra.mrb[16].mxu1 %vm110_vm0, %v357_v35  ;;  %2305 = vtanh.f32 %v230_v43  ;;  %v294_v54 = vadd.f32 %v2596_v62, %v293_v45 }
  0xfa   :  { %v2128_v50 = vpop.f32.mrb[10].mxu1  ;;  %v2625_v51 = vpop.eup %2285  ;;  %v233_v52 = vadd.f32 %v2596_v62, %v232_v48  ;;  %v365_v53 = vpack.c.bf16 %v2620_v46, %v2614_v37  ;;  %v2243_v37 = vld [vmem:[%s3949_s5 + $0x8] ss:$28 sps:$4 sm:$0xff]   ;;  %v2240_v46 = vld [vmem:[%s3949_s5 + $0x70] ss:$28 sps:$4 sm:$0xff]  }
  0xfb   :  { %v296_v55 = vpop.f32.mrb[11].mxu1  ;;  %v2288_v56 = vpop.eup %2287  ;;  %2307 = vtanh.f32 %v241_v47  ;;  %v364_v57 = vpack.c.bf16 %v2625_v51, %v2617_v42  ;;  %v305_v58 = vadd.f32 %v2128_v50, %v2596_v62  ;;  %v2245_v42 = vld [vmem:[%s3949_s5 + $0xc] ss:$28 sps:$4 sm:$0xff]   ;;  %v2242_v50 = vld [vmem:[%s3949_s5 + $0x74] ss:$28 sps:$4 sm:$0xff]  }
  0xfc   :  { %v2290_v59 = vpop.eup %2289  ;;  %2309 = vtanh.f32 %v233_v52  ;;  %v297_v60 = vadd.f32 %v2596_v62, %v296_v55  ;;  %1120 = vmatprep.subr.bf16.mxu1 %v2245_v42  ;;  %v2248_v51 = vld [vmem:[%s3949_s5 + $0x44] ss:$28 sps:$4 sm:$0xff]   ;;  %931 = vmatprep.subr.bf16.mxu0 %v2242_v50  ;;  %v691_v55 = vld [vmem:[%s3949_s5 + $0xa8] sm:$0x11] }
  0xfd   :  { %v2292_v61 = vpop.eup %2291  ;;  %2311 = vtanh.f32 %v302_v49  ;;  %v2115_v1 = vpop.f32.mrb[12].mxu0  ;;  %1121 = vmatpush1.bf16.msra.mxu1 %v2243_v37  ;;  %v2246_v52 = vld [vmem:[%s3949_s5 + $0x40] ss:$28 sps:$4 sm:$0xff]   ;;  %932 = vmatpush1.bf16.msra.mxu0 %v2240_v46  ;;  %v2269_v46 = vld [vmem:[%s3949_s5 + $0x88] ss:$28 sps:$4 sm:$0xff]  }
  0xfe   :  { %v2294_v63 = vpop.eup %2293  ;;  %v359_v0 = vpack.c.bf16 %v2292_v61, %v2288_v56  ;;  %2313 = vtanh.f32 %v294_v54  ;;  %v254_v4 = vadd.f32 %v2115_v1, %v2596_v62  ;;  %v245_v5 = vpop.f32.mrb[13].mxu0  ;;  %1122 = vmatprep.subr.bf16.mxu1 %v2248_v51  ;;  %v2251_v54 = vld [vmem:[%s3949_s5 + $0x78] ss:$28 sps:$4 sm:$0xff]   ;;  %v2399_v1 = vmov 0   ;;  %v2262_v37 = vld [vmem:[%s3949_s5 + $0x80] ss:$28 sps:$4 sm:$0xff]  }
  0xff   :  { %v2636_v2 = vpop.eup %2295  ;;  %v358_v3 = vpack.c.bf16 %v2294_v63, %v2290_v59  ;;  %2315 = vtanh.f32 %v305_v58  ;;  %v2131_v6 = vpop.f32.mrb[12].mxu1  ;;  %v246_v8 = vadd.f32 %v2596_v62, %v245_v5  ;;  %v692_v56 = vld [vmem:[%s3949_s5 + $0xb0] sm:$0x11]  ;;  %v1959_v58 = vcombine.low %v691_v55, %v691_v55  ;;  %959 = vmatprep.mubr.bf16.mxu0 %v2399_v1 }
 0x100   :  { %v2298_v7 = vpop.eup %2297  ;;  %v2116_v9 = vpop.f32.mrb[14].mxu0  ;;  %2317 = vtanh.f32 %v297_v60  ;;  %v318_v14 = vadd.f32 %v2131_v6, %v2596_v62  ;;  %v1962_v59 = vcombine.high %v692_v56, %v692_v56  ;;  %v1961_v60 = vcombine.low %v692_v56, %v692_v56  ;;  %v2270_v56 = vld [vmem:[%s3949_s5 + $0xc0] ss:$0 sps:$4 sm:$0x11]  }
 0x101   :  { %v309_v10 = vpop.f32.mrb[13].mxu1  ;;  %v2300_v11 = vpop.eup %2299  ;;  %2145 = vmatprep.mubr.msk.bf16.mxu1 %vm110_vm0, %v358_v3  ;;  %2319 = vtanh.f32 %v254_v4  ;;  %v257_v12 = vadd.f32 %v2116_v9, %v2596_v62  ;;  %1123 = vmatpush1.bf16.msra.mxu1 %v2246_v52  ;;  %v907_v61 = vsel %vm159_vm1, %v1959_v58, 0  ;;  %v2712_v3 = vld [vmem:[%s3951_s4] ss:$0 sm:$0xff] }
 0x102   :  { %v248_v13 = vpop.f32.mrb[15].mxu0  ;;  %v2132_v15 = vpop.f32.mrb[14].mxu1  ;;  %2146 = vmatmul.mubr.msk.bf16.gmra.mrb[20].mxu1 %vm110_vm0, %v359_v0  ;;  %2321 = vtanh.f32 %v246_v8  ;;  %v367_v18 = vpack.c.bf16 %v2300_v11, %v2636_v2  ;;  %v310_v19 = vadd.f32 %v2596_v62, %v309_v10  ;;  %v913_v63 = vsel %vm159_vm1, %v1961_v60, 0  ;;  %v2258_v0 = vld [vmem:[%s3949_s5 + $0x14] ss:$28 sps:$4 sm:$0xff]  }
 0x103   :  { %v2302_v16 = vpop.eup %2301  ;;  %v249_v17 = vadd.f32 %v2596_v62, %v248_v13  ;;  %v312_v20 = vpop.f32.mrb[15].mxu1  ;;  %2323 = vtanh.f32 %v257_v12  ;;  %v321_v23 = vadd.f32 %v2132_v15, %v2596_v62  ;;  %v2265_v2 = vld [vmem:[%s3949_s5 + $0x18] ss:$28 sps:$4 sm:$0xff]  }
 0x104   :  { %v2304_v21 = vpop.eup %2303  ;;  %v366_v22 = vpack.c.bf16 %v2302_v16, %v2298_v7  ;;  %v313_v25 = vadd.f32 %v2596_v62, %v312_v20 }
 0x105   :  { %v2306_v24 = vpop.eup %2305  ;;  %2325 = vtanh.f32 %v249_v17 }
 0x106   :  { %v2308_v26 = vpop.eup %2307  ;;  %2327 = vtanh.f32 %v318_v14 }
 0x107   :  { %v2310_v27 = vpop.eup %2309  ;;  %v361_v28 = vpack.c.bf16 %v2308_v26, %v2304_v21  ;;  %2329 = vtanh.f32 %v310_v19 }
 0x108   :  { %v2312_v29 = vpop.eup %2311  ;;  %v360_v30 = vpack.c.bf16 %v2310_v27, %v2306_v24  ;;  %2331 = vtanh.f32 %v321_v23  ;;  %v2256_v24 = vld [vmem:[%s3949_s5 + $0x10] ss:$28 sps:$4 sm:$0xff]  }
 0x109   :  { %v2314_v31 = vpop.eup %2313  ;;  %2333 = vtanh.f32 %v313_v25 }
 0x10a   :  { %v2316_v32 = vpop.eup %2315  ;;  %2149 = vmatprep.mubr.msk.bf16.mxu1 %vm110_vm0, %v360_v30  ;;  %v2261_v30 = vld [vmem:[%s3949_s5 + $0x4c] ss:$28 sps:$4 sm:$0xff]  }
 0x10b   :  { %v2318_v33 = vpop.eup %2317  ;;  %2150 = vmatmul.mubr.msk.bf16.gmra.mrb[24].mxu1 %vm110_vm0, %v361_v28  ;;  %v369_v34 = vpack.c.bf16 %v2316_v32, %v2312_v29 }
 0x10c   :  { %v2320_v35 = vpop.eup %2319  ;;  %v368_v36 = vpack.c.bf16 %v2318_v33, %v2314_v31 }
 0x10d   :  { %v2322_v62 = vpop.eup %2321 }
 0x10e   :  { %v2324_v38 = vpop.eup %2323 }
 0x10f   :  { %v2326_v39 = vpop.eup %2325  ;;  %v363_v40 = vpack.c.bf16 %v2324_v38, %v2320_v35  ;;  %v2267_v35 = vld [vmem:[%s3949_s5 + $0x50] ss:$28 sps:$4 sm:$0xff]  }
 0x110   :  { %v2328_v41 = vpop.eup %2327  ;;  %v362_v43 = vpack.c.bf16 %v2326_v39, %v2322_v62  ;;  %v2259_v62 = vld [vmem:[%s3949_s5 + $0x48] ss:$28 sps:$4 sm:$0xff]  }
 0x111   :  { %v2330_v44 = vpop.eup %2329  ;;  %v2264_v39 = vld [vmem:[%s3949_s5 + $0x84] ss:$28 sps:$4 sm:$0xff]  }
 0x112   :  { %v2332_v45 = vpop.eup %2331  ;;  %2153 = vmatprep.mubr.msk.bf16.mxu1 %vm110_vm0, %v362_v43  ;;  %v693_v43 = vld [vmem:[%s3949_s5 + $0xb8] sm:$0x11] }
 0x113   :  { %v2334_v47 = vpop.eup %2333  ;;  %2154 = vmatmul.mubr.msk.bf16.gmra.mrb[28].mxu1 %vm110_vm0, %v363_v40  ;;  %v371_v48 = vpack.c.bf16 %v2332_v45, %v2328_v41  ;;  %v1964_v52 = vcombine.high %v693_v43, %v693_v43 }
 0x114   :  { %2157 = vmatprep.mubr.msk.bf16.mxu1 %vm110_vm0, %v364_v57  ;;  %v370_v49 = vpack.c.bf16 %v2334_v47, %v2330_v44  ;;  %v1960_v57 = vcombine.high %v691_v55, %v691_v55 }
 0x116   :  { %1966 = vmatprep.subr.msk.bf16.mxu0 %vm159_vm1, %v1960_v57 }
 0x117   :  { %934 = vmatpush1.bf16.msra.mxu0 %v907_v61 }
 0x118   :  { %1313 = vmatprep.subr.bf16.mxu0 %v2258_v0 }
 0x11b   :  { %2158 = vmatmul.mubr.msk.bf16.gmra.mrb[32].mxu1 %vm110_vm0, %v365_v53  ;;  %v2253_v53 = vld [vmem:[%s3949_s5 + $0x7c] ss:$28 sps:$4 sm:$0xff]  }
 0x11c   :  { %2161 = vmatprep.mubr.msk.bf16.mxu1 %vm110_vm0, %v366_v22  ;;  %1124 = vmatprep.subr.bf16.mxu1 %v2253_v53  ;;  %v1963_v53 = vcombine.low %v693_v43, %v693_v43 }
 0x11d   :  { %1125 = vmatpush1.bf16.msra.mxu1 %v2251_v54 }
 0x11e   :  { %1983 = vmatprep.subr.msk.bf16.mxu1 %vm159_vm1, %v1962_v59  ;;  %v919_v60 = vsel %vm159_vm1, %v1963_v53, 0 }
 0x121   :  { %1127 = vmatpush1.bf16.msra.mxu1 %v913_v63  ;;  %v925_v63 = vsel %vm159_vm1, %v2270_v56, 0 }
 0x122   :  { %2173 = vmatprep.subr.bf16.mxu1 %v2265_v2 }
 0x123   :  { %2162 = vmatmul.mubr.msk.bf16.gmra.mrb[36].mxu1 %vm110_vm0, %v367_v18 }
 0x124   :  { %2165 = vmatprep.mubr.msk.bf16.mxu1 %vm110_vm0, %v368_v36 }
 0x12b   :  { %2166 = vmatmul.mubr.msk.bf16.gmra.mrb[40].mxu1 %vm110_vm0, %v369_v34 }
 0x12c   :  { %2169 = vmatprep.mubr.msk.bf16.mxu1 %vm110_vm0, %v370_v49 }
 0x133   :  { %2170 = vmatmul.mubr.msk.bf16.gmra.mrb[44].mxu1 %vm110_vm0, %v371_v48 }
 0x134   :  { %1152 = vmatprep.mubr.bf16.mxu1 %v2399_v1 }
 0x1cc   :  { %v2143_v4 = vpop.f32.mrb[16].mxu1 }
 0x1cd   :  { %v501_v5 = vadd.f32 %v2143_v4, %v2712_v3  ;;  %v492_v6 = vpop.f32.mrb[17].mxu1 }
 0x1ce   :  { %v493_v7 = vadd.f32 %v2712_v3, %v492_v6  ;;  %v2144_v8 = vpop.f32.mrb[18].mxu1 }
 0x1cf   :  { %2335 = vtanh.f32 %v501_v5  ;;  %v504_v9 = vadd.f32 %v2144_v8, %v2712_v3  ;;  %v495_v10 = vpop.f32.mrb[19].mxu1 }
 0x1d0   :  { %2337 = vtanh.f32 %v493_v7  ;;  %v496_v11 = vadd.f32 %v2712_v3, %v495_v10 }
 0x1d1   :  { %2339 = vtanh.f32 %v504_v9 }
 0x1d2   :  { %2341 = vtanh.f32 %v496_v11 }
 0x1d5   :  { %v2147_v12 = vpop.f32.mrb[20].mxu1 }
 0x1d6   :  { %v517_v13 = vadd.f32 %v2147_v12, %v2712_v3  ;;  %v508_v14 = vpop.f32.mrb[21].mxu1 }
 0x1d7   :  { %v509_v15 = vadd.f32 %v2712_v3, %v508_v14  ;;  %v2148_v16 = vpop.f32.mrb[22].mxu1 }
 0x1d8   :  { %2343 = vtanh.f32 %v517_v13  ;;  %v520_v17 = vadd.f32 %v2148_v16, %v2712_v3  ;;  %v511_v18 = vpop.f32.mrb[23].mxu1 }
 0x1d9   :  { %2345 = vtanh.f32 %v509_v15  ;;  %v512_v19 = vadd.f32 %v2712_v3, %v511_v18  ;;  %v2336_v20 = vpop.eup %2335 }
 0x1da   :  { %2347 = vtanh.f32 %v520_v17  ;;  %v2338_v21 = vpop.eup %2337 }
 0x1db   :  { %2349 = vtanh.f32 %v512_v19  ;;  %v2340_v22 = vpop.eup %2339 }
 0x1dc   :  { %v2342_v23 = vpop.eup %2341  ;;  %v2725_v26 = vpack.c.bf16 %v2340_v22, %v2336_v20 }
 0x1dd   :  { %v2727_v27 = vpack.c.bf16 %v2342_v23, %v2338_v21 }
 0x1de   :  { %v2151_v25 = vpop.f32.mrb[24].mxu1 }
 0x1df   :  { %v533_v28 = vadd.f32 %v2151_v25, %v2712_v3  ;;  %v524_v29 = vpop.f32.mrb[25].mxu1  ;;  %1967 = vmatmul.mubr.msk.bf16.vlgmr.msra.gmra.mrb[16].mxu0 %vm110_vm0, %v2727_v27  ;;  %1984 = vmatmul.mubr.msk.bf16.vlgmr.msra.gmra.mrb[48].mxu1 %vm110_vm0, %v2727_v27 }
 0x1e0   :  { %v525_v31 = vadd.f32 %v2712_v3, %v524_v29  ;;  %v2152_v32 = vpop.f32.mrb[26].mxu1  ;;  %1314 = vmatpush1.bf16.msra.mxu0 %v2256_v24  ;;  %969 = vmatprep.mubr.bf16.mxu0 %v2399_v1 }
 0x1e1   :  { %2351 = vtanh.f32 %v533_v28  ;;  %v536_v33 = vadd.f32 %v2152_v32, %v2712_v3  ;;  %v527_v34 = vpop.f32.mrb[27].mxu1  ;;  %1162 = vmatprep.mubr.bf16.mxu1 %v2399_v1  ;;  %1315 = vmatprep.subr.bf16.mxu0 %v2261_v30 }
 0x1e2   :  { %2353 = vtanh.f32 %v525_v31  ;;  %v528_v36 = vadd.f32 %v2712_v3, %v527_v34  ;;  %v2344_v38 = vpop.eup %2343  ;;  %2174 = vmatpush3.bf16.msra.mxu1 %v2265_v2 }
 0x1e3   :  { %2355 = vtanh.f32 %v536_v33  ;;  %v2346_v40 = vpop.eup %2345  ;;  %2175 = vmatprep.subr.bf16.mxu1 %v2267_v35 }
 0x1e4   :  { %2357 = vtanh.f32 %v528_v36  ;;  %v2348_v41 = vpop.eup %2347  ;;  %1316 = vmatpush1.bf16.msra.mxu0 %v2259_v62 }
 0x1e5   :  { %v2350_v44 = vpop.eup %2349  ;;  %v2754_v47 = vpack.c.bf16 %v2348_v41, %v2344_v38  ;;  %1317 = vmatprep.subr.bf16.mxu0 %v2264_v39 }
 0x1e6   :  { %v2155_v45 = vpop.f32.mrb[28].mxu1  ;;  %v2756_v48 = vpack.c.bf16 %v2350_v44, %v2346_v40  ;;  %2176 = vmatpush3.bf16.msra.mxu1 %v2267_v35 }
 0x1e7   :  { %v549_v49 = vadd.f32 %v2155_v45, %v2712_v3  ;;  %v540_v42 = vpop.f32.mrb[29].mxu1  ;;  %1968 = vmatmul.mubr.msk.bf16.gmra.mrb[20].mxu0 %vm110_vm0, %v2725_v26  ;;  %1985 = vmatmul.mubr.msk.bf16.gmra.mrb[52].mxu1 %vm110_vm0, %v2725_v26 }
 0x1e8   :  { %v541_v50 = vadd.f32 %v2712_v3, %v540_v42  ;;  %v2156_v51 = vpop.f32.mrb[30].mxu1  ;;  %979 = vmatprep.mubr.bf16.mxu0 %v2399_v1  ;;  %1172 = vmatprep.mubr.bf16.mxu1 %v2399_v1 }
 0x1e9   :  { %2359 = vtanh.f32 %v549_v49  ;;  %v552_v54 = vadd.f32 %v2156_v51, %v2712_v3  ;;  %v543_v55 = vpop.f32.mrb[31].mxu1  ;;  %1318 = vmatpush1.bf16.msra.mxu0 %v2262_v37  ;;  %2177 = vmatprep.subr.bf16.mxu1 %v2269_v46 }
 0x1ea   :  { %2361 = vtanh.f32 %v541_v50  ;;  %v544_v57 = vadd.f32 %v2712_v3, %v543_v55  ;;  %2000 = vmatprep.subr.msk.bf16.mxu0 %vm159_vm1, %v1964_v52  ;;  %2178 = vmatpush3.bf16.msra.mxu1 %v2269_v46 }
 0x1eb   :  { %v2352_v58 = vpop.eup %2351  ;;  %2363 = vtanh.f32 %v552_v54  ;;  %2224 = vmatprep.subr.msk.bf16.mxu1 %vm159_vm1, %v2270_v56 }
 0x1ec   :  { %v2354_v59 = vpop.eup %2353  ;;  %2365 = vtanh.f32 %v544_v57 }
 0x1ed   :  { %v2356_v61 = vpop.eup %2355  ;;  %1320 = vmatpush1.bf16.msra.mxu0 %v919_v60 }
 0x1ee   :  { %v2358_v0 = vpop.eup %2357  ;;  %v2159_v2 = vpop.f32.mrb[32].mxu1  ;;  %v2781_v4 = vpack.c.bf16 %v2356_v61, %v2352_v58  ;;  %2180 = vmatpush3.bf16.msra.mxu1 %v925_v63 }
 0x1ef   :  { %v2783_v5 = vpack.c.bf16 %v2358_v0, %v2354_v59  ;;  %v565_v6 = vadd.f32 %v2159_v2, %v2712_v3  ;;  %v556_v7 = vpop.f32.mrb[33].mxu1  ;;  %1969 = vmatmul.mubr.msk.bf16.gmra.mrb[24].mxu0 %vm110_vm0, %v2756_v48  ;;  %1986 = vmatmul.mubr.msk.bf16.gmra.mrb[56].mxu1 %vm110_vm0, %v2756_v48 }
 0x1f0   :  { %v557_v8 = vadd.f32 %v2712_v3, %v556_v7  ;;  %v2160_v9 = vpop.f32.mrb[34].mxu1  ;;  %989 = vmatprep.mubr.bf16.mxu0 %v2399_v1  ;;  %1182 = vmatprep.mubr.bf16.mxu1 %v2399_v1 }
 0x1f1   :  { %2367 = vtanh.f32 %v565_v6  ;;  %v568_v10 = vadd.f32 %v2160_v9, %v2712_v3  ;;  %v559_v11 = vpop.f32.mrb[35].mxu1 }
 0x1f2   :  { %2369 = vtanh.f32 %v557_v8  ;;  %v560_v12 = vadd.f32 %v2712_v3, %v559_v11 }
 0x1f3   :  { %v2360_v13 = vpop.eup %2359  ;;  %2371 = vtanh.f32 %v568_v10 }
 0x1f4   :  { %v2362_v14 = vpop.eup %2361  ;;  %2373 = vtanh.f32 %v560_v12 }
 0x1f5   :  { %v2364_v15 = vpop.eup %2363 }
 0x1f6   :  { %v2366_v16 = vpop.eup %2365  ;;  %v2163_v17 = vpop.f32.mrb[36].mxu1  ;;  %v2795_v18 = vpack.c.bf16 %v2364_v15, %v2360_v13 }
 0x1f7   :  { %v2797_v19 = vpack.c.bf16 %v2366_v16, %v2362_v14  ;;  %v581_v20 = vadd.f32 %v2163_v17, %v2712_v3  ;;  %v572_v21 = vpop.f32.mrb[37].mxu1  ;;  %1970 = vmatmul.mubr.msk.bf16.gmra.mrb[28].mxu0 %vm110_vm0, %v2754_v47  ;;  %1987 = vmatmul.mubr.msk.bf16.gmra.mrb[60].mxu1 %vm110_vm0, %v2754_v47 }
 0x1f8   :  { %v573_v22 = vadd.f32 %v2712_v3, %v572_v21  ;;  %v2164_v23 = vpop.f32.mrb[38].mxu1  ;;  %999 = vmatprep.mubr.bf16.mxu0 %v2399_v1  ;;  %1192 = vmatprep.mubr.bf16.mxu1 %v2399_v1 }
 0x1f9   :  { %2375 = vtanh.f32 %v581_v20  ;;  %v584_v24 = vadd.f32 %v2164_v23, %v2712_v3  ;;  %v575_v25 = vpop.f32.mrb[39].mxu1 }
 0x1fa   :  { %2377 = vtanh.f32 %v573_v22  ;;  %v576_v28 = vadd.f32 %v2712_v3, %v575_v25 }
 0x1fb   :  { %v2368_v29 = vpop.eup %2367  ;;  %2379 = vtanh.f32 %v584_v24 }
 0x1fc   :  { %v2370_v30 = vpop.eup %2369  ;;  %2381 = vtanh.f32 %v576_v28 }
 0x1fd   :  { %v2372_v31 = vpop.eup %2371 }
 0x1fe   :  { %v2374_v32 = vpop.eup %2373  ;;  %v2167_v33 = vpop.f32.mrb[40].mxu1  ;;  %v2809_v34 = vpack.c.bf16 %v2372_v31, %v2368_v29 }
 0x1ff   :  { %v2811_v35 = vpack.c.bf16 %v2374_v32, %v2370_v30  ;;  %v597_v36 = vadd.f32 %v2167_v33, %v2712_v3  ;;  %v588_v62 = vpop.f32.mrb[41].mxu1  ;;  %1971 = vmatmul.mubr.msk.bf16.gmra.mrb[32].mxu0 %vm110_vm0, %v2783_v5  ;;  %1988 = vmatmul.mubr.msk.bf16.gmra.mrb[64].mxu1 %vm110_vm0, %v2783_v5 }
 0x200   :  { %v589_v38 = vadd.f32 %v2712_v3, %v588_v62  ;;  %v2168_v39 = vpop.f32.mrb[42].mxu1  ;;  %1009 = vmatprep.mubr.bf16.mxu0 %v2399_v1  ;;  %1202 = vmatprep.mubr.bf16.mxu1 %v2399_v1 }
 0x201   :  { %2383 = vtanh.f32 %v597_v36  ;;  %v600_v40 = vadd.f32 %v2168_v39, %v2712_v3  ;;  %v591_v41 = vpop.f32.mrb[43].mxu1 }
 0x202   :  { %2385 = vtanh.f32 %v589_v38  ;;  %v592_v43 = vadd.f32 %v2712_v3, %v591_v41 }
 0x203   :  { %v2376_v44 = vpop.eup %2375  ;;  %2387 = vtanh.f32 %v600_v40 }
 0x204   :  { %v2378_v45 = vpop.eup %2377  ;;  %2389 = vtanh.f32 %v592_v43 }
 0x205   :  { %v2380_v49 = vpop.eup %2379 }
 0x206   :  { %v2382_v42 = vpop.eup %2381  ;;  %v2171_v37 = vpop.f32.mrb[44].mxu1  ;;  %v2823_v46 = vpack.c.bf16 %v2380_v49, %v2376_v44 }
 0x207   :  { %v2825_v50 = vpack.c.bf16 %v2382_v42, %v2378_v45  ;;  %v613_v51 = vadd.f32 %v2171_v37, %v2712_v3  ;;  %v604_v52 = vpop.f32.mrb[45].mxu1  ;;  %1972 = vmatmul.mubr.msk.bf16.gmra.mrb[36].mxu0 %vm110_vm0, %v2781_v4  ;;  %1989 = vmatmul.mubr.msk.bf16.gmra.mrb[68].mxu1 %vm110_vm0, %v2781_v4 }
 0x208   :  { %v605_v53 = vadd.f32 %v2712_v3, %v604_v52  ;;  %v2172_v54 = vpop.f32.mrb[46].mxu1  ;;  %1019 = vmatprep.mubr.bf16.mxu0 %v2399_v1  ;;  %1212 = vmatprep.mubr.bf16.mxu1 %v2399_v1 }
 0x209   :  { %2391 = vtanh.f32 %v613_v51  ;;  %v616_v55 = vadd.f32 %v2172_v54, %v2712_v3  ;;  %v607_v56 = vpop.f32.mrb[47].mxu1 }
 0x20a   :  { %2393 = vtanh.f32 %v605_v53  ;;  %v608_v57 = vadd.f32 %v2712_v3, %v607_v56 }
 0x20b   :  { %v2384_v58 = vpop.eup %2383  ;;  %2395 = vtanh.f32 %v616_v55 }
 0x20c   :  { %v2386_v59 = vpop.eup %2385  ;;  %2397 = vtanh.f32 %v608_v57 }
 0x20d   :  { %v2388_v60 = vpop.eup %2387 }
 0x20e   :  { %v2390_v61 = vpop.eup %2389  ;;  %v2837_v63 = vpack.c.bf16 %v2388_v60, %v2384_v58 }
 0x20f   :  { %v2839_v0 = vpack.c.bf16 %v2390_v61, %v2386_v59  ;;  %1973 = vmatmul.mubr.msk.bf16.gmra.mrb[40].mxu0 %vm110_vm0, %v2797_v19  ;;  %1990 = vmatmul.mubr.msk.bf16.gmra.mrb[72].mxu1 %vm110_vm0, %v2797_v19 }
 0x210   :  { %1029 = vmatprep.mubr.bf16.mxu0 %v2399_v1  ;;  %1222 = vmatprep.mubr.bf16.mxu1 %v2399_v1 }
 0x213   :  { %v2392_v3 = vpop.eup %2391 }
 0x214   :  { %v2394_v2 = vpop.eup %2393 }
 0x215   :  { %v2396_v6 = vpop.eup %2395 }
 0x216   :  { %v2398_v7 = vpop.eup %2397  ;;  %v2847_v8 = vpack.c.bf16 %v2396_v6, %v2392_v3 }
 0x217   :  { %v2849_v9 = vpack.c.bf16 %v2398_v7, %v2394_v2  ;;  %1974 = vmatmul.mubr.msk.bf16.gmra.mrb[44].mxu0 %vm110_vm0, %v2795_v18  ;;  %1991 = vmatmul.mubr.msk.bf16.gmra.mrb[76].mxu1 %vm110_vm0, %v2795_v18 }
 0x218   :  { %1039 = vmatprep.mubr.bf16.mxu0 %v2399_v1  ;;  %1232 = vmatprep.mubr.bf16.mxu1 %v2399_v1 }
 0x21f   :  { %1975 = vmatmul.mubr.msk.bf16.gmra.mrb[48].mxu0 %vm110_vm0, %v2811_v35  ;;  %1992 = vmatmul.mubr.msk.bf16.gmra.mrb[80].mxu1 %vm110_vm0, %v2811_v35 }
 0x220   :  { %1049 = vmatprep.mubr.bf16.mxu0 %v2399_v1  ;;  %1242 = vmatprep.mubr.bf16.mxu1 %v2399_v1 }
 0x227   :  { %1976 = vmatmul.mubr.msk.bf16.gmra.mrb[52].mxu0 %vm110_vm0, %v2809_v34  ;;  %1993 = vmatmul.mubr.msk.bf16.gmra.mrb[84].mxu1 %vm110_vm0, %v2809_v34 }
 0x228   :  { %1059 = vmatprep.mubr.bf16.mxu0 %v2399_v1  ;;  %1252 = vmatprep.mubr.bf16.mxu1 %v2399_v1 }
 0x22f   :  { %1977 = vmatmul.mubr.msk.bf16.gmra.mrb[56].mxu0 %vm110_vm0, %v2825_v50  ;;  %1994 = vmatmul.mubr.msk.bf16.gmra.mrb[88].mxu1 %vm110_vm0, %v2825_v50 }
 0x230   :  { %1069 = vmatprep.mubr.bf16.mxu0 %v2399_v1  ;;  %1262 = vmatprep.mubr.bf16.mxu1 %v2399_v1 }
 0x237   :  { %1978 = vmatmul.mubr.msk.bf16.gmra.mrb[60].mxu0 %vm110_vm0, %v2823_v46  ;;  %1995 = vmatmul.mubr.msk.bf16.gmra.mrb[92].mxu1 %vm110_vm0, %v2823_v46 }
 0x238   :  { %1079 = vmatprep.mubr.bf16.mxu0 %v2399_v1  ;;  %1272 = vmatprep.mubr.bf16.mxu1 %v2399_v1 }
 0x23f   :  { %1979 = vmatmul.mubr.msk.bf16.gmra.mrb[64].mxu0 %vm110_vm0, %v2839_v0  ;;  %1996 = vmatmul.mubr.msk.bf16.gmra.mrb[96].mxu1 %vm110_vm0, %v2839_v0 }
 0x240   :  { %1089 = vmatprep.mubr.bf16.mxu0 %v2399_v1  ;;  %1282 = vmatprep.mubr.bf16.mxu1 %v2399_v1 }
 0x247   :  { %1980 = vmatmul.mubr.msk.bf16.gmra.mrb[68].mxu0 %vm110_vm0, %v2837_v63  ;;  %1997 = vmatmul.mubr.msk.bf16.gmra.mrb[100].mxu1 %vm110_vm0, %v2837_v63 }
 0x248   :  { %1099 = vmatprep.mubr.bf16.mxu0 %v2399_v1  ;;  %1292 = vmatprep.mubr.bf16.mxu1 %v2399_v1 }
 0x24f   :  { %1981 = vmatmul.mubr.msk.bf16.gmra.mrb[72].mxu0 %vm110_vm0, %v2849_v9  ;;  %1998 = vmatmul.mubr.msk.bf16.gmra.mrb[104].mxu1 %vm110_vm0, %v2849_v9 }
 0x250   :  { %1109 = vmatprep.mubr.bf16.mxu0 %v2399_v1  ;;  %1302 = vmatprep.mubr.bf16.mxu1 %v2399_v1 }
 0x257   :  { %1982 = vmatmul.mubr.msk.bf16.gmra.mrb[76].mxu0 %vm110_vm0, %v2847_v8  ;;  %1999 = vmatmul.mubr.msk.bf16.gmra.mrb[108].mxu1 %vm110_vm0, %v2847_v8 }
 0x258   :  { %2181 = vmatprep.mubr.msk.bf16.mxu1 %vm110_vm0, %v2727_v27  ;;  %1345 = vmatprep.mubr.bf16.mxu0 %v2399_v1 }
 0x25f   :  { %2001 = vmatmul.mubr.msk.bf16.vlgmr.msra.gmra.mrb[80].mxu0 %vm110_vm0, %v2727_v27  ;;  %2182 = vmatmul.mubr.msk.bf16.vlgmr.msra.gmra.mrb[112].mxu1 %vm110_vm0, %v2725_v26 }
 0x260   :  { %2185 = vmatprep.mubr.msk.bf16.mxu1 %vm110_vm0, %v2756_v48  ;;  %1355 = vmatprep.mubr.bf16.mxu0 %v2399_v1 }
 0x267   :  { %2002 = vmatmul.mubr.msk.bf16.gmra.mrb[84].mxu0 %vm110_vm0, %v2725_v26  ;;  %2186 = vmatmul.mubr.msk.bf16.gmra.mrb[116].mxu1 %vm110_vm0, %v2754_v47  ;;  %v697_v26 = vlaneseq }
 0x268   :  { %2189 = vmatprep.mubr.msk.bf16.mxu1 %vm110_vm0, %v2783_v5  ;;  %1365 = vmatprep.mubr.bf16.mxu0 %v2399_v1 }
 0x269   :  { %v2965_v27 = vshrl.u32 %v697_v26, 7 }
 0x26b   :  { %v711_v10 = vsub.s32 3, %v2965_v27 }
 0x26f   :  { %2003 = vmatmul.mubr.msk.bf16.gmra.mrb[88].mxu0 %vm110_vm0, %v2756_v48  ;;  %2190 = vmatmul.mubr.msk.bf16.gmra.mrb[120].mxu1 %vm110_vm0, %v2781_v4  ;;  %v707_v48 = vsub.s32 2, %v2965_v27 }
 0x270   :  { %2193 = vmatprep.mubr.msk.bf16.mxu1 %vm110_vm0, %v2797_v19  ;;  %1375 = vmatprep.mubr.bf16.mxu0 %v2399_v1 }
 0x277   :  { %2004 = vmatmul.mubr.msk.bf16.gmra.mrb[92].mxu0 %vm110_vm0, %v2754_v47  ;;  %2194 = vmatmul.mubr.msk.bf16.gmra.mrb[124].mxu1 %vm110_vm0, %v2795_v18  ;;  %v699_v47 = vsub.s32 0, %v2965_v27 }
 0x278   :  { %2197 = vmatprep.mubr.msk.bf16.mxu1 %vm110_vm0, %v2811_v35  ;;  %1385 = vmatprep.mubr.bf16.mxu0 %v2399_v1 }
 0x27f   :  { %2005 = vmatmul.mubr.msk.bf16.gmra.mrb[96].mxu0 %vm110_vm0, %v2783_v5  ;;  %2198 = vmatmul.mubr.msk.bf16.gmra.mrb[128].mxu1 %vm110_vm0, %v2809_v34  ;;  %v703_v5 = vsub.s32 1, %v2965_v27 }
 0x280   :  { %2201 = vmatprep.mubr.msk.bf16.mxu1 %vm110_vm0, %v2825_v50  ;;  %1395 = vmatprep.mubr.bf16.mxu0 %v2399_v1 }
 0x287   :  { %2006 = vmatmul.mubr.msk.bf16.gmra.mrb[100].mxu0 %vm110_vm0, %v2781_v4  ;;  %2202 = vmatmul.mubr.msk.bf16.gmra.mrb[132].mxu1 %vm110_vm0, %v2823_v46  ;;  %v2973_v4 = vld [vmem:[%s3952_s6] sm:$0x7f] }
 0x288   :  { %2205 = vmatprep.mubr.msk.bf16.mxu1 %vm110_vm0, %v2839_v0  ;;  %1405 = vmatprep.mubr.bf16.mxu0 %v2399_v1  ;;  %v2980_v11 = vrot.slane %v2973_v4, %v699_v47  ;;  %v2983_v12 = vrot.slane %v2973_v4, %v707_v48  ;;  %v2986_v13 = vrot.slane %v2973_v4, %v703_v5 }
 0x289   :  { %v2989_v14 = vrot.slane %v2973_v4, %v711_v10 }
 0x28f   :  { %2007 = vmatmul.mubr.msk.bf16.gmra.mrb[104].mxu0 %vm110_vm0, %v2797_v19  ;;  %2206 = vmatmul.mubr.msk.bf16.gmra.mrb[136].mxu1 %vm110_vm0, %v2837_v63 }
 0x290   :  { %2209 = vmatprep.mubr.msk.bf16.mxu1 %vm110_vm0, %v2849_v9  ;;  %1415 = vmatprep.mubr.bf16.mxu0 %v2399_v1 }
 0x297   :  { %2008 = vmatmul.mubr.msk.bf16.gmra.mrb[108].mxu0 %vm110_vm0, %v2795_v18  ;;  %2210 = vmatmul.mubr.msk.bf16.gmra.mrb[140].mxu1 %vm110_vm0, %v2847_v8 }
 0x298   :  { %1425 = vmatprep.mubr.bf16.mxu0 %v2399_v1 }
 0x29f   :  { %2009 = vmatmul.mubr.msk.bf16.gmra.mrb[112].mxu0 %vm110_vm0, %v2811_v35 }
 0x2a0   :  { %1435 = vmatprep.mubr.bf16.mxu0 %v2399_v1 }
 0x2a7   :  { %2010 = vmatmul.mubr.msk.bf16.gmra.mrb[116].mxu0 %vm110_vm0, %v2809_v34 }
 0x2a8   :  { %1445 = vmatprep.mubr.bf16.mxu0 %v2399_v1 }
 0x2af   :  { %2011 = vmatmul.mubr.msk.bf16.gmra.mrb[120].mxu0 %vm110_vm0, %v2825_v50 }
 0x2b0   :  { %1455 = vmatprep.mubr.bf16.mxu0 %v2399_v1 }
 0x2b2   :  { %v961_v15 = vpop.f32.mrb[16].mxu0  ;;  %v1154_v16 = vpop.f32.mrb[48].mxu1 }
 0x2b3   :  { %v962_v17 = vadd.f32 %v961_v15, %v2980_v11  ;;  %v1155_v18 = vadd.f32 %v1154_v16, %v2983_v12  ;;  %v963_v19 = vpop.f32.mrb[17].mxu0  ;;  %v1156_v20 = vpop.f32.mrb[49].mxu1 }
 0x2b4   :  { %v964_v21 = vadd.f32 %v963_v19, %v2986_v13  ;;  %v1157_v22 = vadd.f32 %v1156_v20, %v2989_v14  ;;  %v965_v23 = vpop.f32.mrb[18].mxu0  ;;  %v1158_v24 = vpop.f32.mrb[50].mxu1 }
 0x2b5   :  { %1667 = vst [vmem:[%s3953_s7] sm:$0xff] %v962_v17  ;;  %1669 = vst [vmem:[%s3953_s7 + $0x10] sm:$0xff] %v1155_v18  ;;  %v966_v25 = vadd.f32 %v965_v23, %v2980_v11  ;;  %v1159_v28 = vadd.f32 %v1158_v24, %v2983_v12  ;;  %v967_v29 = vpop.f32.mrb[19].mxu0  ;;  %v1160_v30 = vpop.f32.mrb[51].mxu1 }
 0x2b6   :  { %1668 = vst [vmem:[%s3953_s7 + $0x8] sm:$0xff] %v964_v21  ;;  %1670 = vst [vmem:[%s3953_s7 + $0x18] sm:$0xff] %v1157_v22  ;;  %v968_v31 = vadd.f32 %v967_v29, %v2986_v13  ;;  %v1161_v32 = vadd.f32 %v1160_v30, %v2989_v14 }
 0x2b7   :  { %1675 = vst [vmem:[%s3953_s7 + $0x38] sm:$0xff] %v966_v25  ;;  %1677 = vst [vmem:[%s3953_s7 + $0x48] sm:$0xff] %v1159_v28  ;;  %2012 = vmatmul.mubr.msk.bf16.gmra.mrb[124].mxu0 %vm110_vm0, %v2823_v46 }
 0x2b8   :  { %1676 = vst [vmem:[%s3953_s7 + $0x40] sm:$0xff] %v968_v31  ;;  %1678 = vst [vmem:[%s3953_s7 + $0x50] sm:$0xff] %v1161_v32  ;;  %1465 = vmatprep.mubr.bf16.mxu0 %v2399_v1 }
 0x2ba   :  { %v971_v33 = vpop.f32.mrb[20].mxu0  ;;  %v1164_v34 = vpop.f32.mrb[52].mxu1 }
 0x2bb   :  { %v972_v35 = vadd.f32 %v971_v33, %v2980_v11  ;;  %v1165_v36 = vadd.f32 %v1164_v34, %v2983_v12  ;;  %v973_v62 = vpop.f32.mrb[21].mxu0  ;;  %v1166_v38 = vpop.f32.mrb[53].mxu1 }
 0x2bc   :  { %v974_v39 = vadd.f32 %v973_v62, %v2986_v13  ;;  %v1167_v40 = vadd.f32 %v1166_v38, %v2989_v14  ;;  %v975_v41 = vpop.f32.mrb[22].mxu0  ;;  %v1168_v43 = vpop.f32.mrb[54].mxu1 }
 0x2bd   :  { %1682 = vst [vmem:[%s3953_s7 + $0x70] sm:$0xff] %v972_v35  ;;  %1684 = vst [vmem:[%s3953_s7 + $0x80] sm:$0xff] %v1165_v36  ;;  %v976_v44 = vadd.f32 %v975_v41, %v2980_v11  ;;  %v1169_v45 = vadd.f32 %v1168_v43, %v2983_v12  ;;  %v977_v49 = vpop.f32.mrb[23].mxu0  ;;  %v1170_v42 = vpop.f32.mrb[55].mxu1 }
 0x2be   :  { %1683 = vst [vmem:[%s3953_s7 + $0x78] sm:$0xff] %v974_v39  ;;  %1685 = vst [vmem:[%s3953_s7 + $0x88] sm:$0xff] %v1167_v40  ;;  %v978_v37 = vadd.f32 %v977_v49, %v2986_v13  ;;  %v1171_v46 = vadd.f32 %v1170_v42, %v2989_v14 }
 0x2bf   :  { %1689 = vst [vmem:[%s3953_s7 + $0xa8] sm:$0xff] %v976_v44  ;;  %1691 = vst [vmem:[%s3953_s7 + $0xb8] sm:$0xff] %v1169_v45  ;;  %2013 = vmatmul.mubr.msk.bf16.gmra.mrb[128].mxu0 %vm110_vm0, %v2839_v0 }
 0x2c0   :  { %1690 = vst [vmem:[%s3953_s7 + $0xb0] sm:$0xff] %v978_v37  ;;  %1692 = vst [vmem:[%s3953_s7 + $0xc0] sm:$0xff] %v1171_v46  ;;  %1475 = vmatprep.mubr.bf16.mxu0 %v2399_v1 }
 0x2c2   :  { %v981_v50 = vpop.f32.mrb[24].mxu0  ;;  %v1174_v51 = vpop.f32.mrb[56].mxu1 }
 0x2c3   :  { %v982_v52 = vadd.f32 %v981_v50, %v2980_v11  ;;  %v1175_v53 = vadd.f32 %v1174_v51, %v2983_v12  ;;  %v983_v54 = vpop.f32.mrb[25].mxu0  ;;  %v1176_v55 = vpop.f32.mrb[57].mxu1 }
 0x2c4   :  { %v984_v56 = vadd.f32 %v983_v54, %v2986_v13  ;;  %v1177_v57 = vadd.f32 %v1176_v55, %v2989_v14  ;;  %v985_v58 = vpop.f32.mrb[26].mxu0  ;;  %v1178_v59 = vpop.f32.mrb[58].mxu1 }
 0x2c5   :  { %1696 = vst [vmem:[%s3953_s7 + $0xe0] sm:$0xff] %v982_v52  ;;  %1698 = vst [vmem:[%s3953_s7 + $0xf0] sm:$0xff] %v1175_v53  ;;  %v986_v60 = vadd.f32 %v985_v58, %v2980_v11  ;;  %v1179_v61 = vadd.f32 %v1178_v59, %v2983_v12  ;;  %v987_v0 = vpop.f32.mrb[27].mxu0  ;;  %v1180_v3 = vpop.f32.mrb[59].mxu1 }
 0x2c6   :  { %1697 = vst [vmem:[%s3953_s7 + $0xe8] sm:$0xff] %v984_v56  ;;  %1699 = vst [vmem:[%s3953_s7 + $0xf8] sm:$0xff] %v1177_v57  ;;  %v988_v2 = vadd.f32 %v987_v0, %v2986_v13  ;;  %v1181_v6 = vadd.f32 %v1180_v3, %v2989_v14 }
 0x2c7   :  { %1703 = vst [vmem:[%s3953_s7 + $0x118] sm:$0xff] %v986_v60  ;;  %1705 = vst [vmem:[%s3953_s7 + $0x128] sm:$0xff] %v1179_v61  ;;  %2014 = vmatmul.mubr.msk.bf16.gmra.mrb[132].mxu0 %vm110_vm0, %v2837_v63 }
 0x2c8   :  { %1704 = vst [vmem:[%s3953_s7 + $0x120] sm:$0xff] %v988_v2  ;;  %1706 = vst [vmem:[%s3953_s7 + $0x130] sm:$0xff] %v1181_v6  ;;  %1485 = vmatprep.mubr.bf16.mxu0 %v2399_v1 }
 0x2ca   :  { %v991_v7 = vpop.f32.mrb[28].mxu0  ;;  %v1184_v26 = vpop.f32.mrb[60].mxu1 }
 0x2cb   :  { %v992_v47 = vadd.f32 %v991_v7, %v2980_v11  ;;  %v1185_v48 = vadd.f32 %v1184_v26, %v2983_v12  ;;  %v993_v5 = vpop.f32.mrb[29].mxu0  ;;  %v1186_v10 = vpop.f32.mrb[61].mxu1 }
 0x2cc   :  { %v994_v63 = vadd.f32 %v993_v5, %v2986_v13  ;;  %v1187_v15 = vadd.f32 %v1186_v10, %v2989_v14  ;;  %v995_v16 = vpop.f32.mrb[30].mxu0  ;;  %v1188_v17 = vpop.f32.mrb[62].mxu1 }
 0x2cd   :  { %1710 = vst [vmem:[%s3953_s7 + $0x150] sm:$0xff] %v992_v47  ;;  %1712 = vst [vmem:[%s3953_s7 + $0x160] sm:$0xff] %v1185_v48  ;;  %v996_v18 = vadd.f32 %v995_v16, %v2980_v11  ;;  %v1189_v19 = vadd.f32 %v1188_v17, %v2983_v12  ;;  %v997_v20 = vpop.f32.mrb[31].mxu0  ;;  %v1190_v21 = vpop.f32.mrb[63].mxu1 }
 0x2ce   :  { %1711 = vst [vmem:[%s3953_s7 + $0x158] sm:$0xff] %v994_v63  ;;  %1713 = vst [vmem:[%s3953_s7 + $0x168] sm:$0xff] %v1187_v15  ;;  %v998_v22 = vadd.f32 %v997_v20, %v2986_v13  ;;  %v1191_v23 = vadd.f32 %v1190_v21, %v2989_v14 }
 0x2cf   :  { %1717 = vst [vmem:[%s3953_s7 + $0x188] sm:$0xff] %v996_v18  ;;  %1719 = vst [vmem:[%s3953_s7 + $0x198] sm:$0xff] %v1189_v19  ;;  %2015 = vmatmul.mubr.msk.bf16.gmra.mrb[136].mxu0 %vm110_vm0, %v2849_v9 }
 0x2d0   :  { %1718 = vst [vmem:[%s3953_s7 + $0x190] sm:$0xff] %v998_v22  ;;  %1720 = vst [vmem:[%s3953_s7 + $0x1a0] sm:$0xff] %v1191_v23  ;;  %1495 = vmatprep.mubr.bf16.mxu0 %v2399_v1 }
 0x2d2   :  { %v1001_v24 = vpop.f32.mrb[32].mxu0  ;;  %v1194_v25 = vpop.f32.mrb[64].mxu1 }
 0x2d3   :  { %v1002_v28 = vadd.f32 %v1001_v24, %v2980_v11  ;;  %v1195_v29 = vadd.f32 %v1194_v25, %v2983_v12  ;;  %v1003_v30 = vpop.f32.mrb[33].mxu0  ;;  %v1196_v31 = vpop.f32.mrb[65].mxu1 }
 0x2d4   :  { %v1004_v9 = vadd.f32 %v1003_v30, %v2986_v13  ;;  %v1197_v32 = vadd.f32 %v1196_v31, %v2989_v14  ;;  %v1005_v33 = vpop.f32.mrb[34].mxu0  ;;  %v1198_v34 = vpop.f32.mrb[66].mxu1 }
 0x2d5   :  { %1724 = vst [vmem:[%s3953_s7 + $0x1c0] sm:$0xff] %v1002_v28  ;;  %1726 = vst [vmem:[%s3953_s7 + $0x1d0] sm:$0xff] %v1195_v29  ;;  %v1006_v1 = vadd.f32 %v1005_v33, %v2980_v11  ;;  %v1199_v35 = vadd.f32 %v1198_v34, %v2983_v12  ;;  %v1007_v36 = vpop.f32.mrb[35].mxu0  ;;  %v1200_v62 = vpop.f32.mrb[67].mxu1 }
 0x2d6   :  { %1725 = vst [vmem:[%s3953_s7 + $0x1c8] sm:$0xff] %v1004_v9  ;;  %1727 = vst [vmem:[%s3953_s7 + $0x1d8] sm:$0xff] %v1197_v32  ;;  %v1008_v38 = vadd.f32 %v1007_v36, %v2986_v13  ;;  %v1201_v39 = vadd.f32 %v1200_v62, %v2989_v14 }
 0x2d7   :  { %1731 = vst [vmem:[%s3953_s7 + $0x1f8] sm:$0xff] %v1006_v1  ;;  %1733 = vst [vmem:[%s3953_s7 + $0x208] sm:$0xff] %v1199_v35  ;;  %2016 = vmatmul.mubr.msk.bf16.gmra.mrb[140].mxu0 %vm110_vm0, %v2847_v8 }
 0x2d8   :  { %1732 = vst [vmem:[%s3953_s7 + $0x200] sm:$0xff] %v1008_v38  ;;  %1734 = vst [vmem:[%s3953_s7 + $0x210] sm:$0xff] %v1201_v39 }
 0x2da   :  { %v1011_v40 = vpop.f32.mrb[36].mxu0  ;;  %v1204_v41 = vpop.f32.mrb[68].mxu1 }
 0x2db   :  { %v1012_v43 = vadd.f32 %v1011_v40, %v2980_v11  ;;  %v1205_v44 = vadd.f32 %v1204_v41, %v2983_v12  ;;  %v1013_v45 = vpop.f32.mrb[37].mxu0  ;;  %v1206_v49 = vpop.f32.mrb[69].mxu1 }
 0x2dc   :  { %v1014_v42 = vadd.f32 %v1013_v45, %v2986_v13  ;;  %v1207_v8 = vadd.f32 %v1206_v49, %v2989_v14  ;;  %v1015_v37 = vpop.f32.mrb[38].mxu0  ;;  %v1208_v46 = vpop.f32.mrb[70].mxu1 }
 0x2dd   :  { %1738 = vst [vmem:[%s3953_s7 + $0x230] sm:$0xff] %v1012_v43  ;;  %1740 = vst [vmem:[%s3953_s7 + $0x240] sm:$0xff] %v1205_v44  ;;  %v1016_v50 = vadd.f32 %v1015_v37, %v2980_v11  ;;  %v1209_v51 = vadd.f32 %v1208_v46, %v2983_v12  ;;  %v1017_v52 = vpop.f32.mrb[39].mxu0  ;;  %v1210_v53 = vpop.f32.mrb[71].mxu1 }
 0x2de   :  { %1739 = vst [vmem:[%s3953_s7 + $0x238] sm:$0xff] %v1014_v42  ;;  %1741 = vst [vmem:[%s3953_s7 + $0x248] sm:$0xff] %v1207_v8  ;;  %v1018_v54 = vadd.f32 %v1017_v52, %v2986_v13  ;;  %v1211_v55 = vadd.f32 %v1210_v53, %v2989_v14 }
 0x2df   :  { %1745 = vst [vmem:[%s3953_s7 + $0x268] sm:$0xff] %v1016_v50  ;;  %1747 = vst [vmem:[%s3953_s7 + $0x278] sm:$0xff] %v1209_v51 }
 0x2e0   :  { %1746 = vst [vmem:[%s3953_s7 + $0x270] sm:$0xff] %v1018_v54  ;;  %1748 = vst [vmem:[%s3953_s7 + $0x280] sm:$0xff] %v1211_v55 }
 0x2e2   :  { %v1021_v56 = vpop.f32.mrb[40].mxu0  ;;  %v1214_v57 = vpop.f32.mrb[72].mxu1 }
 0x2e3   :  { %v1022_v58 = vadd.f32 %v1021_v56, %v2980_v11  ;;  %v1215_v59 = vadd.f32 %v1214_v57, %v2983_v12  ;;  %v1023_v60 = vpop.f32.mrb[41].mxu0  ;;  %v1216_v61 = vpop.f32.mrb[73].mxu1 }
 0x2e4   :  { %v1024_v0 = vadd.f32 %v1023_v60, %v2986_v13  ;;  %v1217_v3 = vadd.f32 %v1216_v61, %v2989_v14  ;;  %v1025_v2 = vpop.f32.mrb[42].mxu0  ;;  %v1218_v6 = vpop.f32.mrb[74].mxu1 }
 0x2e5   :  { %1752 = vst [vmem:[%s3953_s7 + $0x2a0] sm:$0xff] %v1022_v58  ;;  %1754 = vst [vmem:[%s3953_s7 + $0x2b0] sm:$0xff] %v1215_v59  ;;  %v1026_v7 = vadd.f32 %v1025_v2, %v2980_v11  ;;  %v1219_v26 = vadd.f32 %v1218_v6, %v2983_v12  ;;  %v1027_v47 = vpop.f32.mrb[43].mxu0  ;;  %v1220_v48 = vpop.f32.mrb[75].mxu1 }
 0x2e6   :  { %1753 = vst [vmem:[%s3953_s7 + $0x2a8] sm:$0xff] %v1024_v0  ;;  %1755 = vst [vmem:[%s3953_s7 + $0x2b8] sm:$0xff] %v1217_v3  ;;  %v1028_v5 = vadd.f32 %v1027_v47, %v2986_v13  ;;  %v1221_v10 = vadd.f32 %v1220_v48, %v2989_v14 }
 0x2e7   :  { %1759 = vst [vmem:[%s3953_s7 + $0x2d8] sm:$0xff] %v1026_v7  ;;  %1761 = vst [vmem:[%s3953_s7 + $0x2e8] sm:$0xff] %v1219_v26 }
 0x2e8   :  { %1760 = vst [vmem:[%s3953_s7 + $0x2e0] sm:$0xff] %v1028_v5  ;;  %1762 = vst [vmem:[%s3953_s7 + $0x2f0] sm:$0xff] %v1221_v10 }
 0x2ea   :  { %v1031_v63 = vpop.f32.mrb[44].mxu0  ;;  %v1224_v15 = vpop.f32.mrb[76].mxu1 }
 0x2eb   :  { %v1032_v16 = vadd.f32 %v1031_v63, %v2980_v11  ;;  %v1225_v17 = vadd.f32 %v1224_v15, %v2983_v12  ;;  %v1033_v18 = vpop.f32.mrb[45].mxu0  ;;  %v1226_v19 = vpop.f32.mrb[77].mxu1 }
 0x2ec   :  { %v1034_v20 = vadd.f32 %v1033_v18, %v2986_v13  ;;  %v1227_v21 = vadd.f32 %v1226_v19, %v2989_v14  ;;  %v1035_v22 = vpop.f32.mrb[46].mxu0  ;;  %v1228_v23 = vpop.f32.mrb[78].mxu1 }
 0x2ed   :  { %1766 = vst [vmem:[%s3953_s7 + $0x310] sm:$0xff] %v1032_v16  ;;  %1768 = vst [vmem:[%s3953_s7 + $0x320] sm:$0xff] %v1225_v17  ;;  %v1036_v24 = vadd.f32 %v1035_v22, %v2980_v11  ;;  %v1229_v25 = vadd.f32 %v1228_v23, %v2983_v12  ;;  %v1037_v28 = vpop.f32.mrb[47].mxu0  ;;  %v1230_v29 = vpop.f32.mrb[79].mxu1 }
 0x2ee   :  { %1767 = vst [vmem:[%s3953_s7 + $0x318] sm:$0xff] %v1034_v20  ;;  %1769 = vst [vmem:[%s3953_s7 + $0x328] sm:$0xff] %v1227_v21  ;;  %v1038_v30 = vadd.f32 %v1037_v28, %v2986_v13  ;;  %v1231_v31 = vadd.f32 %v1230_v29, %v2989_v14 }
 0x2ef   :  { %1773 = vst [vmem:[%s3953_s7 + $0x348] sm:$0xff] %v1036_v24  ;;  %1775 = vst [vmem:[%s3953_s7 + $0x358] sm:$0xff] %v1229_v25 }
 0x2f0   :  { %1774 = vst [vmem:[%s3953_s7 + $0x350] sm:$0xff] %v1038_v30  ;;  %1776 = vst [vmem:[%s3953_s7 + $0x360] sm:$0xff] %v1231_v31 }
 0x2f2   :  { %v1041_v9 = vpop.f32.mrb[48].mxu0  ;;  %v1234_v32 = vpop.f32.mrb[80].mxu1 }
 0x2f3   :  { %v1042_v33 = vadd.f32 %v1041_v9, %v2980_v11  ;;  %v1235_v34 = vadd.f32 %v1234_v32, %v2983_v12  ;;  %v1043_v1 = vpop.f32.mrb[49].mxu0  ;;  %v1236_v35 = vpop.f32.mrb[81].mxu1 }
 0x2f4   :  { %v1044_v36 = vadd.f32 %v1043_v1, %v2986_v13  ;;  %v1237_v62 = vadd.f32 %v1236_v35, %v2989_v14  ;;  %v1045_v38 = vpop.f32.mrb[50].mxu0  ;;  %v1238_v39 = vpop.f32.mrb[82].mxu1 }
 0x2f5   :  { %1780 = vst [vmem:[%s3953_s7 + $0x380] sm:$0xff] %v1042_v33  ;;  %1782 = vst [vmem:[%s3953_s7 + $0x390] sm:$0xff] %v1235_v34  ;;  %v1046_v40 = vadd.f32 %v1045_v38, %v2980_v11  ;;  %v1239_v41 = vadd.f32 %v1238_v39, %v2983_v12  ;;  %v1047_v43 = vpop.f32.mrb[51].mxu0  ;;  %v1240_v44 = vpop.f32.mrb[83].mxu1 }
 0x2f6   :  { %1781 = vst [vmem:[%s3953_s7 + $0x388] sm:$0xff] %v1044_v36  ;;  %1783 = vst [vmem:[%s3953_s7 + $0x398] sm:$0xff] %v1237_v62  ;;  %v1048_v45 = vadd.f32 %v1047_v43, %v2986_v13  ;;  %v1241_v49 = vadd.f32 %v1240_v44, %v2989_v14 }
 0x2f7   :  { %1787 = vst [vmem:[%s3953_s7 + $0x3b8] sm:$0xff] %v1046_v40  ;;  %1789 = vst [vmem:[%s3953_s7 + $0x3c8] sm:$0xff] %v1239_v41 }
 0x2f8   :  { %1788 = vst [vmem:[%s3953_s7 + $0x3c0] sm:$0xff] %v1048_v45  ;;  %1790 = vst [vmem:[%s3953_s7 + $0x3d0] sm:$0xff] %v1241_v49 }
 0x2fa   :  { %v1051_v42 = vpop.f32.mrb[52].mxu0  ;;  %v1244_v8 = vpop.f32.mrb[84].mxu1 }
 0x2fb   :  { %v1052_v37 = vadd.f32 %v1051_v42, %v2980_v11  ;;  %v1245_v46 = vadd.f32 %v1244_v8, %v2983_v12  ;;  %v1053_v50 = vpop.f32.mrb[53].mxu0  ;;  %v1246_v51 = vpop.f32.mrb[85].mxu1 }
 0x2fc   :  { %v1054_v52 = vadd.f32 %v1053_v50, %v2986_v13  ;;  %v1247_v53 = vadd.f32 %v1246_v51, %v2989_v14  ;;  %v1055_v54 = vpop.f32.mrb[54].mxu0  ;;  %v1248_v55 = vpop.f32.mrb[86].mxu1 }
 0x2fd   :  { %1794 = vst [vmem:[%s3953_s7 + $0x3f0] sm:$0xff] %v1052_v37  ;;  %1796 = vst [vmem:[%s3953_s7 + $0x400] sm:$0xff] %v1245_v46  ;;  %v1056_v56 = vadd.f32 %v1055_v54, %v2980_v11  ;;  %v1249_v57 = vadd.f32 %v1248_v55, %v2983_v12  ;;  %v1057_v58 = vpop.f32.mrb[55].mxu0  ;;  %v1250_v59 = vpop.f32.mrb[87].mxu1 }
 0x2fe   :  { %1795 = vst [vmem:[%s3953_s7 + $0x3f8] sm:$0xff] %v1054_v52  ;;  %1797 = vst [vmem:[%s3953_s7 + $0x408] sm:$0xff] %v1247_v53  ;;  %v1058_v60 = vadd.f32 %v1057_v58, %v2986_v13  ;;  %v1251_v61 = vadd.f32 %v1250_v59, %v2989_v14 }
 0x2ff   :  { %1801 = vst [vmem:[%s3953_s7 + $0x428] sm:$0xff] %v1056_v56  ;;  %1803 = vst [vmem:[%s3953_s7 + $0x438] sm:$0xff] %v1249_v57 }
 0x300   :  { %1802 = vst [vmem:[%s3953_s7 + $0x430] sm:$0xff] %v1058_v60  ;;  %1804 = vst [vmem:[%s3953_s7 + $0x440] sm:$0xff] %v1251_v61 }
 0x302   :  { %v1061_v0 = vpop.f32.mrb[56].mxu0  ;;  %v1254_v3 = vpop.f32.mrb[88].mxu1 }
 0x303   :  { %v1062_v2 = vadd.f32 %v1061_v0, %v2980_v11  ;;  %v1255_v6 = vadd.f32 %v1254_v3, %v2983_v12  ;;  %v1063_v7 = vpop.f32.mrb[57].mxu0  ;;  %v1256_v26 = vpop.f32.mrb[89].mxu1 }
 0x304   :  { %v1064_v47 = vadd.f32 %v1063_v7, %v2986_v13  ;;  %v1257_v48 = vadd.f32 %v1256_v26, %v2989_v14  ;;  %v1065_v5 = vpop.f32.mrb[58].mxu0  ;;  %v1258_v10 = vpop.f32.mrb[90].mxu1 }
 0x305   :  { %1808 = vst [vmem:[%s3953_s7 + $0x460] sm:$0xff] %v1062_v2  ;;  %1810 = vst [vmem:[%s3953_s7 + $0x470] sm:$0xff] %v1255_v6  ;;  %v1066_v63 = vadd.f32 %v1065_v5, %v2980_v11  ;;  %v1259_v15 = vadd.f32 %v1258_v10, %v2983_v12  ;;  %v1067_v16 = vpop.f32.mrb[59].mxu0  ;;  %v1260_v17 = vpop.f32.mrb[91].mxu1 }
 0x306   :  { %1809 = vst [vmem:[%s3953_s7 + $0x468] sm:$0xff] %v1064_v47  ;;  %1811 = vst [vmem:[%s3953_s7 + $0x478] sm:$0xff] %v1257_v48  ;;  %v1068_v18 = vadd.f32 %v1067_v16, %v2986_v13  ;;  %v1261_v19 = vadd.f32 %v1260_v17, %v2989_v14 }
 0x307   :  { %1815 = vst [vmem:[%s3953_s7 + $0x498] sm:$0xff] %v1066_v63  ;;  %1817 = vst [vmem:[%s3953_s7 + $0x4a8] sm:$0xff] %v1259_v15 }
 0x308   :  { %1816 = vst [vmem:[%s3953_s7 + $0x4a0] sm:$0xff] %v1068_v18  ;;  %1818 = vst [vmem:[%s3953_s7 + $0x4b0] sm:$0xff] %v1261_v19 }
 0x30a   :  { %v1071_v20 = vpop.f32.mrb[60].mxu0  ;;  %v1264_v21 = vpop.f32.mrb[92].mxu1 }
 0x30b   :  { %v1072_v22 = vadd.f32 %v1071_v20, %v2980_v11  ;;  %v1265_v23 = vadd.f32 %v1264_v21, %v2983_v12  ;;  %v1073_v24 = vpop.f32.mrb[61].mxu0  ;;  %v1266_v25 = vpop.f32.mrb[93].mxu1 }
 0x30c   :  { %v1074_v28 = vadd.f32 %v1073_v24, %v2986_v13  ;;  %v1267_v29 = vadd.f32 %v1266_v25, %v2989_v14  ;;  %v1075_v30 = vpop.f32.mrb[62].mxu0  ;;  %v1268_v31 = vpop.f32.mrb[94].mxu1 }
 0x30d   :  { %1822 = vst [vmem:[%s3953_s7 + $0x4d0] sm:$0xff] %v1072_v22  ;;  %1824 = vst [vmem:[%s3953_s7 + $0x4e0] sm:$0xff] %v1265_v23  ;;  %v1076_v9 = vadd.f32 %v1075_v30, %v2980_v11  ;;  %v1269_v32 = vadd.f32 %v1268_v31, %v2983_v12  ;;  %v1077_v33 = vpop.f32.mrb[63].mxu0  ;;  %v1270_v34 = vpop.f32.mrb[95].mxu1 }
 0x30e   :  { %1823 = vst [vmem:[%s3953_s7 + $0x4d8] sm:$0xff] %v1074_v28  ;;  %1825 = vst [vmem:[%s3953_s7 + $0x4e8] sm:$0xff] %v1267_v29  ;;  %v1078_v1 = vadd.f32 %v1077_v33, %v2986_v13  ;;  %v1271_v35 = vadd.f32 %v1270_v34, %v2989_v14  ;;  %v715_v33 = vsub.s32 4, %v2965_v27  ;;  %v723_v34 = vsub.s32 6, %v2965_v27 }
 0x30f   :  { %1829 = vst [vmem:[%s3953_s7 + $0x508] sm:$0xff] %v1076_v9  ;;  %1831 = vst [vmem:[%s3953_s7 + $0x518] sm:$0xff] %v1269_v32 }
 0x310   :  { %1830 = vst [vmem:[%s3953_s7 + $0x510] sm:$0xff] %v1078_v1  ;;  %1832 = vst [vmem:[%s3953_s7 + $0x520] sm:$0xff] %v1271_v35 }
 0x312   :  { %v1081_v36 = vpop.f32.mrb[64].mxu0  ;;  %v1274_v62 = vpop.f32.mrb[96].mxu1 }
 0x313   :  { %v1082_v38 = vadd.f32 %v1081_v36, %v2980_v11  ;;  %v1275_v39 = vadd.f32 %v1274_v62, %v2983_v12  ;;  %v1083_v40 = vpop.f32.mrb[65].mxu0  ;;  %v1276_v41 = vpop.f32.mrb[97].mxu1 }
 0x314   :  { %v1084_v43 = vadd.f32 %v1083_v40, %v2986_v13  ;;  %v1277_v44 = vadd.f32 %v1276_v41, %v2989_v14  ;;  %v1085_v45 = vpop.f32.mrb[66].mxu0  ;;  %v1278_v49 = vpop.f32.mrb[98].mxu1 }
 0x315   :  { %1836 = vst [vmem:[%s3953_s7 + $0x540] sm:$0xff] %v1082_v38  ;;  %1838 = vst [vmem:[%s3953_s7 + $0x550] sm:$0xff] %v1275_v39  ;;  %v1086_v42 = vadd.f32 %v1085_v45, %v2980_v11  ;;  %v1279_v8 = vadd.f32 %v1278_v49, %v2983_v12  ;;  %v1087_v37 = vpop.f32.mrb[67].mxu0  ;;  %v1280_v46 = vpop.f32.mrb[99].mxu1  ;;  %v719_v38 = vsub.s32 5, %v2965_v27 }
 0x316   :  { %1837 = vst [vmem:[%s3953_s7 + $0x548] sm:$0xff] %v1084_v43  ;;  %1839 = vst [vmem:[%s3953_s7 + $0x558] sm:$0xff] %v1277_v44  ;;  %v1088_v50 = vadd.f32 %v1087_v37, %v2986_v13  ;;  %v1281_v51 = vadd.f32 %v1280_v46, %v2989_v14 }
 0x317   :  { %1843 = vst [vmem:[%s3953_s7 + $0x578] sm:$0xff] %v1086_v42  ;;  %1845 = vst [vmem:[%s3953_s7 + $0x588] sm:$0xff] %v1279_v8 }
 0x318   :  { %1844 = vst [vmem:[%s3953_s7 + $0x580] sm:$0xff] %v1088_v50  ;;  %1846 = vst [vmem:[%s3953_s7 + $0x590] sm:$0xff] %v1281_v51 }
 0x31a   :  { %v1091_v52 = vpop.f32.mrb[68].mxu0  ;;  %v1284_v53 = vpop.f32.mrb[100].mxu1 }
 0x31b   :  { %v1092_v54 = vadd.f32 %v1091_v52, %v2980_v11  ;;  %v1285_v55 = vadd.f32 %v1284_v53, %v2983_v12  ;;  %v1093_v56 = vpop.f32.mrb[69].mxu0  ;;  %v1286_v57 = vpop.f32.mrb[101].mxu1 }
 0x31c   :  { %v1094_v58 = vadd.f32 %v1093_v56, %v2986_v13  ;;  %v1287_v59 = vadd.f32 %v1286_v57, %v2989_v14  ;;  %v1095_v60 = vpop.f32.mrb[70].mxu0  ;;  %v1288_v61 = vpop.f32.mrb[102].mxu1 }
 0x31d   :  { %1850 = vst [vmem:[%s3953_s7 + $0x5b0] sm:$0xff] %v1092_v54  ;;  %1852 = vst [vmem:[%s3953_s7 + $0x5c0] sm:$0xff] %v1285_v55  ;;  %v1096_v0 = vadd.f32 %v1095_v60, %v2980_v11  ;;  %v1289_v3 = vadd.f32 %v1288_v61, %v2983_v12  ;;  %v1097_v2 = vpop.f32.mrb[71].mxu0  ;;  %v1290_v6 = vpop.f32.mrb[103].mxu1 }
 0x31e   :  { %1851 = vst [vmem:[%s3953_s7 + $0x5b8] sm:$0xff] %v1094_v58  ;;  %1853 = vst [vmem:[%s3953_s7 + $0x5c8] sm:$0xff] %v1287_v59  ;;  %v1098_v7 = vadd.f32 %v1097_v2, %v2986_v13  ;;  %v1291_v26 = vadd.f32 %v1290_v6, %v2989_v14 }
 0x31f   :  { %1857 = vst [vmem:[%s3953_s7 + $0x5e8] sm:$0xff] %v1096_v0  ;;  %1859 = vst [vmem:[%s3953_s7 + $0x5f8] sm:$0xff] %v1289_v3 }
 0x320   :  { %1858 = vst [vmem:[%s3953_s7 + $0x5f0] sm:$0xff] %v1098_v7  ;;  %1860 = vst [vmem:[%s3953_s7 + $0x600] sm:$0xff] %v1291_v26 }
 0x322   :  { %v1101_v47 = vpop.f32.mrb[72].mxu0  ;;  %v1294_v48 = vpop.f32.mrb[104].mxu1 }
 0x323   :  { %v1102_v5 = vadd.f32 %v1101_v47, %v2980_v11  ;;  %v1295_v10 = vadd.f32 %v1294_v48, %v2983_v12  ;;  %v1103_v63 = vpop.f32.mrb[73].mxu0  ;;  %v1296_v15 = vpop.f32.mrb[105].mxu1 }
 0x324   :  { %v1104_v16 = vadd.f32 %v1103_v63, %v2986_v13  ;;  %v1297_v17 = vadd.f32 %v1296_v15, %v2989_v14  ;;  %v1105_v18 = vpop.f32.mrb[74].mxu0  ;;  %v1298_v19 = vpop.f32.mrb[106].mxu1 }
 0x325   :  { %1864 = vst [vmem:[%s3953_s7 + $0x620] sm:$0xff] %v1102_v5  ;;  %1866 = vst [vmem:[%s3953_s7 + $0x630] sm:$0xff] %v1295_v10  ;;  %v1106_v20 = vadd.f32 %v1105_v18, %v2980_v11  ;;  %v1299_v21 = vadd.f32 %v1298_v19, %v2983_v12  ;;  %v1107_v22 = vpop.f32.mrb[75].mxu0  ;;  %v1300_v23 = vpop.f32.mrb[107].mxu1 }
 0x326   :  { %1865 = vst [vmem:[%s3953_s7 + $0x628] sm:$0xff] %v1104_v16  ;;  %1867 = vst [vmem:[%s3953_s7 + $0x638] sm:$0xff] %v1297_v17  ;;  %v1108_v24 = vadd.f32 %v1107_v22, %v2986_v13  ;;  %v1301_v25 = vadd.f32 %v1300_v23, %v2989_v14 }
 0x327   :  { %1871 = vst [vmem:[%s3953_s7 + $0x658] sm:$0xff] %v1106_v20  ;;  %1873 = vst [vmem:[%s3953_s7 + $0x668] sm:$0xff] %v1299_v21 }
 0x328   :  { %1872 = vst [vmem:[%s3953_s7 + $0x660] sm:$0xff] %v1108_v24  ;;  %1874 = vst [vmem:[%s3953_s7 + $0x670] sm:$0xff] %v1301_v25 }
 0x32a   :  { %v1111_v28 = vpop.f32.mrb[76].mxu0  ;;  %v1304_v29 = vpop.f32.mrb[108].mxu1 }
 0x32b   :  { %v1112_v30 = vadd.f32 %v1111_v28, %v2980_v11  ;;  %v1305_v31 = vadd.f32 %v1304_v29, %v2983_v12  ;;  %v1113_v9 = vpop.f32.mrb[77].mxu0  ;;  %v1306_v32 = vpop.f32.mrb[109].mxu1 }
 0x32c   :  { %v1114_v1 = vadd.f32 %v1113_v9, %v2986_v13  ;;  %v1307_v35 = vadd.f32 %v1306_v32, %v2989_v14  ;;  %v1115_v36 = vpop.f32.mrb[78].mxu0  ;;  %v1308_v62 = vpop.f32.mrb[110].mxu1 }
 0x32d   :  { %1878 = vst [vmem:[%s3953_s7 + $0x690] sm:$0xff] %v1112_v30  ;;  %1880 = vst [vmem:[%s3953_s7 + $0x6a0] sm:$0xff] %v1305_v31  ;;  %v1116_v39 = vadd.f32 %v1115_v36, %v2980_v11  ;;  %v1309_v40 = vadd.f32 %v1308_v62, %v2983_v12  ;;  %v1117_v41 = vpop.f32.mrb[79].mxu0  ;;  %v1310_v43 = vpop.f32.mrb[111].mxu1  ;;  %v3516_v11 = vrot.slane %v2973_v4, %v715_v33 }
 0x32e   :  { %1879 = vst [vmem:[%s3953_s7 + $0x698] sm:$0xff] %v1114_v1  ;;  %1881 = vst [vmem:[%s3953_s7 + $0x6a8] sm:$0xff] %v1307_v35  ;;  %v1118_v27 = vadd.f32 %v1117_v41, %v2986_v13  ;;  %v1311_v44 = vadd.f32 %v1310_v43, %v2989_v14  ;;  %v3519_v12 = vrot.slane %v2973_v4, %v723_v34 }
 0x32f   :  { %1885 = vst [vmem:[%s3953_s7 + $0x6c8] sm:$0xff] %v1116_v39  ;;  %1887 = vst [vmem:[%s3953_s7 + $0x6d8] sm:$0xff] %v1309_v40  ;;  %v3528_v13 = vrot.slane %v2973_v4, %v719_v38 }
 0x330   :  { %1886 = vst [vmem:[%s3953_s7 + $0x6d0] sm:$0xff] %v1118_v27  ;;  %1888 = vst [vmem:[%s3953_s7 + $0x6e0] sm:$0xff] %v1311_v44 }
 0x332   :  { %v1347_v14 = vpop.f32.mrb[80].mxu0  ;;  %v2183_v45 = vpop.f32.mrb[112].mxu1 }
 0x333   :  { %v1348_v49 = vadd.f32 %v1347_v14, %v3516_v11  ;;  %v1549_v42 = vadd.f32 %v2183_v45, %v3519_v12  ;;  %v1349_v8 = vpop.f32.mrb[81].mxu0  ;;  %v1540_v37 = vpop.f32.mrb[113].mxu1 }
 0x334   :  { %v1350_v46 = vadd.f32 %v1349_v8, %v3528_v13  ;;  %v1541_v50 = vadd.f32 %v1540_v37, %v3519_v12  ;;  %v1351_v51 = vpop.f32.mrb[82].mxu0  ;;  %v2184_v52 = vpop.f32.mrb[114].mxu1 }
 0x335   :  { %1671 = vst [vmem:[%s3953_s7 + $0x20] sm:$0xff] %v1348_v49  ;;  %1688 = vst.msk [vmem:[%s3953_s7 + $0xa0] sm:$0xff] %vm1673_vm2, %v1549_v42  ;;  %v1352_v4 = vadd.f32 %v1351_v51, %v3516_v11  ;;  %v1552_v53 = vadd.f32 %v2184_v52, %v3519_v12  ;;  %v1353_v54 = vpop.f32.mrb[83].mxu0  ;;  %v1543_v55 = vpop.f32.mrb[115].mxu1 }
 0x336   :  { %1672 = vst [vmem:[%s3953_s7 + $0x28] sm:$0xff] %v1350_v46  ;;  %1674 = vst.msk [vmem:[%s3953_s7 + $0x30] sm:$0xff] %vm1673_vm2, %v1541_v50  ;;  %v1354_v56 = vadd.f32 %v1353_v54, %v3528_v13  ;;  %v1544_v57 = vadd.f32 %v1543_v55, %v3519_v12 }
 0x337   :  { %1679 = vst [vmem:[%s3953_s7 + $0x58] sm:$0xff] %v1352_v4  ;;  %1695 = vst.msk [vmem:[%s3953_s7 + $0xd8] sm:$0xff] %vm1673_vm2, %v1552_v53 }
 0x338   :  { %1680 = vst [vmem:[%s3953_s7 + $0x60] sm:$0xff] %v1354_v56  ;;  %1681 = vst.msk [vmem:[%s3953_s7 + $0x68] sm:$0xff] %vm1673_vm2, %v1544_v57 }
 0x33a   :  { %v1357_v58 = vpop.f32.mrb[84].mxu0  ;;  %v2187_v59 = vpop.f32.mrb[116].mxu1 }
 0x33b   :  { %v1358_v60 = vadd.f32 %v1357_v58, %v3516_v11  ;;  %v1565_v61 = vadd.f32 %v2187_v59, %v3519_v12  ;;  %v1359_v0 = vpop.f32.mrb[85].mxu0  ;;  %v1556_v3 = vpop.f32.mrb[117].mxu1 }
 0x33c   :  { %v1360_v2 = vadd.f32 %v1359_v0, %v3528_v13  ;;  %v1557_v6 = vadd.f32 %v1556_v3, %v3519_v12  ;;  %v1361_v7 = vpop.f32.mrb[86].mxu0  ;;  %v2188_v26 = vpop.f32.mrb[118].mxu1 }
 0x33d   :  { %1686 = vst [vmem:[%s3953_s7 + $0x90] sm:$0xff] %v1358_v60  ;;  %1716 = vst.msk [vmem:[%s3953_s7 + $0x180] sm:$0xff] %vm1673_vm2, %v1565_v61  ;;  %v1362_v47 = vadd.f32 %v1361_v7, %v3516_v11  ;;  %v1568_v48 = vadd.f32 %v2188_v26, %v3519_v12  ;;  %v1363_v5 = vpop.f32.mrb[87].mxu0  ;;  %v1559_v10 = vpop.f32.mrb[119].mxu1 }
 0x33e   :  { %1687 = vst [vmem:[%s3953_s7 + $0x98] sm:$0xff] %v1360_v2  ;;  %1702 = vst.msk [vmem:[%s3953_s7 + $0x110] sm:$0xff] %vm1673_vm2, %v1557_v6  ;;  %v1364_v63 = vadd.f32 %v1363_v5, %v3528_v13  ;;  %v1560_v15 = vadd.f32 %v1559_v10, %v3519_v12 }
 0x33f   :  { %1693 = vst [vmem:[%s3953_s7 + $0xc8] sm:$0xff] %v1362_v47  ;;  %1723 = vst.msk [vmem:[%s3953_s7 + $0x1b8] sm:$0xff] %vm1673_vm2, %v1568_v48 }
 0x340   :  { %1694 = vst [vmem:[%s3953_s7 + $0xd0] sm:$0xff] %v1364_v63  ;;  %1709 = vst.msk [vmem:[%s3953_s7 + $0x148] sm:$0xff] %vm1673_vm2, %v1560_v15 }
 0x342   :  { %v1367_v16 = vpop.f32.mrb[88].mxu0  ;;  %v2191_v17 = vpop.f32.mrb[120].mxu1 }
 0x343   :  { %v1368_v18 = vadd.f32 %v1367_v16, %v3516_v11  ;;  %v1581_v19 = vadd.f32 %v2191_v17, %v3519_v12  ;;  %v1369_v20 = vpop.f32.mrb[89].mxu0  ;;  %v1572_v21 = vpop.f32.mrb[121].mxu1 }
 0x344   :  { %v1370_v22 = vadd.f32 %v1369_v20, %v3528_v13  ;;  %v1573_v23 = vadd.f32 %v1572_v21, %v3519_v12  ;;  %v1371_v24 = vpop.f32.mrb[90].mxu0  ;;  %v2192_v25 = vpop.f32.mrb[122].mxu1 }
 0x345   :  { %1700 = vst [vmem:[%s3953_s7 + $0x100] sm:$0xff] %v1368_v18  ;;  %1744 = vst.msk [vmem:[%s3953_s7 + $0x260] sm:$0xff] %vm1673_vm2, %v1581_v19  ;;  %v1372_v28 = vadd.f32 %v1371_v24, %v3516_v11  ;;  %v1584_v29 = vadd.f32 %v2192_v25, %v3519_v12  ;;  %v1373_v30 = vpop.f32.mrb[91].mxu0  ;;  %v1575_v31 = vpop.f32.mrb[123].mxu1 }
 0x346   :  { %1701 = vst [vmem:[%s3953_s7 + $0x108] sm:$0xff] %v1370_v22  ;;  %1730 = vst.msk [vmem:[%s3953_s7 + $0x1f0] sm:$0xff] %vm1673_vm2, %v1573_v23  ;;  %v1374_v9 = vadd.f32 %v1373_v30, %v3528_v13  ;;  %v1576_v32 = vadd.f32 %v1575_v31, %v3519_v12 }
 0x347   :  { %1707 = vst [vmem:[%s3953_s7 + $0x138] sm:$0xff] %v1372_v28  ;;  %1751 = vst.msk [vmem:[%s3953_s7 + $0x298] sm:$0xff] %vm1673_vm2, %v1584_v29 }
 0x348   :  { %1708 = vst [vmem:[%s3953_s7 + $0x140] sm:$0xff] %v1374_v9  ;;  %1737 = vst.msk [vmem:[%s3953_s7 + $0x228] sm:$0xff] %vm1673_vm2, %v1576_v32 }
 0x34a   :  { %v1377_v33 = vpop.f32.mrb[92].mxu0  ;;  %v2195_v34 = vpop.f32.mrb[124].mxu1 }
 0x34b   :  { %v1378_v1 = vadd.f32 %v1377_v33, %v3516_v11  ;;  %v1597_v35 = vadd.f32 %v2195_v34, %v3519_v12  ;;  %v1379_v36 = vpop.f32.mrb[93].mxu0  ;;  %v1588_v62 = vpop.f32.mrb[125].mxu1 }
 0x34c   :  { %v1380_v38 = vadd.f32 %v1379_v36, %v3528_v13  ;;  %v1589_v39 = vadd.f32 %v1588_v62, %v3519_v12  ;;  %v1381_v40 = vpop.f32.mrb[94].mxu0  ;;  %v2196_v41 = vpop.f32.mrb[126].mxu1 }
 0x34d   :  { %1714 = vst [vmem:[%s3953_s7 + $0x170] sm:$0xff] %v1378_v1  ;;  %1772 = vst.msk [vmem:[%s3953_s7 + $0x340] sm:$0xff] %vm1673_vm2, %v1597_v35  ;;  %v1382_v43 = vadd.f32 %v1381_v40, %v3516_v11  ;;  %v1600_v27 = vadd.f32 %v2196_v41, %v3519_v12  ;;  %v1383_v44 = vpop.f32.mrb[95].mxu0  ;;  %v1591_v14 = vpop.f32.mrb[127].mxu1 }
 0x34e   :  { %1715 = vst [vmem:[%s3953_s7 + $0x178] sm:$0xff] %v1380_v38  ;;  %1758 = vst.msk [vmem:[%s3953_s7 + $0x2d0] sm:$0xff] %vm1673_vm2, %v1589_v39  ;;  %v1384_v45 = vadd.f32 %v1383_v44, %v3528_v13  ;;  %v1592_v49 = vadd.f32 %v1591_v14, %v3519_v12 }
 0x34f   :  { %1721 = vst [vmem:[%s3953_s7 + $0x1a8] sm:$0xff] %v1382_v43  ;;  %1779 = vst.msk [vmem:[%s3953_s7 + $0x378] sm:$0xff] %vm1673_vm2, %v1600_v27 }
 0x350   :  { %1722 = vst [vmem:[%s3953_s7 + $0x1b0] sm:$0xff] %v1384_v45  ;;  %1765 = vst.msk [vmem:[%s3953_s7 + $0x308] sm:$0xff] %vm1673_vm2, %v1592_v49 }
 0x352   :  { %v1387_v42 = vpop.f32.mrb[96].mxu0  ;;  %v2199_v8 = vpop.f32.mrb[128].mxu1 }
 0x353   :  { %v1388_v37 = vadd.f32 %v1387_v42, %v3516_v11  ;;  %v1613_v46 = vadd.f32 %v2199_v8, %v3519_v12  ;;  %v1389_v50 = vpop.f32.mrb[97].mxu0  ;;  %v1604_v51 = vpop.f32.mrb[129].mxu1 }
 0x354   :  { %v1390_v52 = vadd.f32 %v1389_v50, %v3528_v13  ;;  %v1605_v4 = vadd.f32 %v1604_v51, %v3519_v12  ;;  %v1391_v53 = vpop.f32.mrb[98].mxu0  ;;  %v2200_v54 = vpop.f32.mrb[130].mxu1 }
 0x355   :  { %1728 = vst [vmem:[%s3953_s7 + $0x1e0] sm:$0xff] %v1388_v37  ;;  %1800 = vst.msk [vmem:[%s3953_s7 + $0x420] sm:$0xff] %vm1673_vm2, %v1613_v46  ;;  %v1392_v55 = vadd.f32 %v1391_v53, %v3516_v11  ;;  %v1616_v56 = vadd.f32 %v2200_v54, %v3519_v12  ;;  %v1393_v57 = vpop.f32.mrb[99].mxu0  ;;  %v1607_v58 = vpop.f32.mrb[131].mxu1 }
 0x356   :  { %1729 = vst [vmem:[%s3953_s7 + $0x1e8] sm:$0xff] %v1390_v52  ;;  %1786 = vst.msk [vmem:[%s3953_s7 + $0x3b0] sm:$0xff] %vm1673_vm2, %v1605_v4  ;;  %v1394_v59 = vadd.f32 %v1393_v57, %v3528_v13  ;;  %v1608_v60 = vadd.f32 %v1607_v58, %v3519_v12 }
 0x357   :  { %1735 = vst [vmem:[%s3953_s7 + $0x218] sm:$0xff] %v1392_v55  ;;  %1807 = vst.msk [vmem:[%s3953_s7 + $0x458] sm:$0xff] %vm1673_vm2, %v1616_v56 }
 0x358   :  { %1736 = vst [vmem:[%s3953_s7 + $0x220] sm:$0xff] %v1394_v59  ;;  %1793 = vst.msk [vmem:[%s3953_s7 + $0x3e8] sm:$0xff] %vm1673_vm2, %v1608_v60 }
 0x35a   :  { %v1397_v61 = vpop.f32.mrb[100].mxu0  ;;  %v2203_v0 = vpop.f32.mrb[132].mxu1 }
 0x35b   :  { %v1398_v3 = vadd.f32 %v1397_v61, %v3516_v11  ;;  %v1629_v2 = vadd.f32 %v2203_v0, %v3519_v12  ;;  %v1399_v6 = vpop.f32.mrb[101].mxu0  ;;  %v1620_v7 = vpop.f32.mrb[133].mxu1 }
 0x35c   :  { %v1400_v26 = vadd.f32 %v1399_v6, %v3528_v13  ;;  %v1621_v47 = vadd.f32 %v1620_v7, %v3519_v12  ;;  %v1401_v48 = vpop.f32.mrb[102].mxu0  ;;  %v2204_v5 = vpop.f32.mrb[134].mxu1 }
 0x35d   :  { %1742 = vst [vmem:[%s3953_s7 + $0x250] sm:$0xff] %v1398_v3  ;;  %1828 = vst.msk [vmem:[%s3953_s7 + $0x500] sm:$0xff] %vm1673_vm2, %v1629_v2  ;;  %v1402_v10 = vadd.f32 %v1401_v48, %v3516_v11  ;;  %v1632_v63 = vadd.f32 %v2204_v5, %v3519_v12  ;;  %v1403_v15 = vpop.f32.mrb[103].mxu0  ;;  %v1623_v16 = vpop.f32.mrb[135].mxu1 }
 0x35e   :  { %1743 = vst [vmem:[%s3953_s7 + $0x258] sm:$0xff] %v1400_v26  ;;  %1814 = vst.msk [vmem:[%s3953_s7 + $0x490] sm:$0xff] %vm1673_vm2, %v1621_v47  ;;  %v1404_v17 = vadd.f32 %v1403_v15, %v3528_v13  ;;  %v1624_v18 = vadd.f32 %v1623_v16, %v3519_v12 }
 0x35f   :  { %1749 = vst [vmem:[%s3953_s7 + $0x288] sm:$0xff] %v1402_v10  ;;  %1835 = vst.msk [vmem:[%s3953_s7 + $0x538] sm:$0xff] %vm1673_vm2, %v1632_v63 }
 0x360   :  { %1750 = vst [vmem:[%s3953_s7 + $0x290] sm:$0xff] %v1404_v17  ;;  %1821 = vst.msk [vmem:[%s3953_s7 + $0x4c8] sm:$0xff] %vm1673_vm2, %v1624_v18 }
 0x362   :  { %v1407_v19 = vpop.f32.mrb[104].mxu0  ;;  %v2207_v20 = vpop.f32.mrb[136].mxu1 }
 0x363   :  { %v1408_v21 = vadd.f32 %v1407_v19, %v3516_v11  ;;  %v1645_v22 = vadd.f32 %v2207_v20, %v3519_v12  ;;  %v1409_v23 = vpop.f32.mrb[105].mxu0  ;;  %v1636_v24 = vpop.f32.mrb[137].mxu1 }
 0x364   :  { %v1410_v25 = vadd.f32 %v1409_v23, %v3528_v13  ;;  %v1637_v28 = vadd.f32 %v1636_v24, %v3519_v12  ;;  %v1411_v29 = vpop.f32.mrb[106].mxu0  ;;  %v2208_v30 = vpop.f32.mrb[138].mxu1 }
 0x365   :  { %1756 = vst [vmem:[%s3953_s7 + $0x2c0] sm:$0xff] %v1408_v21  ;;  %1856 = vst.msk [vmem:[%s3953_s7 + $0x5e0] sm:$0xff] %vm1673_vm2, %v1645_v22  ;;  %v1412_v31 = vadd.f32 %v1411_v29, %v3516_v11  ;;  %v1648_v9 = vadd.f32 %v2208_v30, %v3519_v12  ;;  %v1413_v32 = vpop.f32.mrb[107].mxu0  ;;  %v1639_v33 = vpop.f32.mrb[139].mxu1 }
 0x366   :  { %1757 = vst [vmem:[%s3953_s7 + $0x2c8] sm:$0xff] %v1410_v25  ;;  %1842 = vst.msk [vmem:[%s3953_s7 + $0x570] sm:$0xff] %vm1673_vm2, %v1637_v28  ;;  %v1414_v34 = vadd.f32 %v1413_v32, %v3528_v13  ;;  %v1640_v1 = vadd.f32 %v1639_v33, %v3519_v12 }
 0x367   :  { %1763 = vst [vmem:[%s3953_s7 + $0x2f8] sm:$0xff] %v1412_v31  ;;  %1863 = vst.msk [vmem:[%s3953_s7 + $0x618] sm:$0xff] %vm1673_vm2, %v1648_v9 }
 0x368   :  { %1764 = vst [vmem:[%s3953_s7 + $0x300] sm:$0xff] %v1414_v34  ;;  %1849 = vst.msk [vmem:[%s3953_s7 + $0x5a8] sm:$0xff] %vm1673_vm2, %v1640_v1 }
 0x36a   :  { %v1417_v35 = vpop.f32.mrb[108].mxu0  ;;  %v2211_v36 = vpop.f32.mrb[140].mxu1 }
 0x36b   :  { %v1418_v62 = vadd.f32 %v1417_v35, %v3516_v11  ;;  %v1661_v38 = vadd.f32 %v2211_v36, %v3519_v12  ;;  %v1419_v39 = vpop.f32.mrb[109].mxu0  ;;  %v1652_v40 = vpop.f32.mrb[141].mxu1 }
 0x36c   :  { %v1420_v41 = vadd.f32 %v1419_v39, %v3528_v13  ;;  %v1653_v43 = vadd.f32 %v1652_v40, %v3519_v12  ;;  %v1421_v27 = vpop.f32.mrb[110].mxu0  ;;  %v2212_v44 = vpop.f32.mrb[142].mxu1 }
 0x36d   :  { %1770 = vst [vmem:[%s3953_s7 + $0x330] sm:$0xff] %v1418_v62  ;;  %1884 = vst.msk [vmem:[%s3953_s7 + $0x6c0] sm:$0xff] %vm1673_vm2, %v1661_v38  ;;  %v1422_v14 = vadd.f32 %v1421_v27, %v3516_v11  ;;  %v1664_v45 = vadd.f32 %v2212_v44, %v3519_v12  ;;  %v1423_v49 = vpop.f32.mrb[111].mxu0  ;;  %v1655_v42 = vpop.f32.mrb[143].mxu1 }
 0x36e   :  { %1771 = vst [vmem:[%s3953_s7 + $0x338] sm:$0xff] %v1420_v41  ;;  %1870 = vst.msk [vmem:[%s3953_s7 + $0x650] sm:$0xff] %vm1673_vm2, %v1653_v43  ;;  %v1424_v8 = vadd.f32 %v1423_v49, %v3528_v13  ;;  %v1656_v37 = vadd.f32 %v1655_v42, %v3519_v12 }
 0x36f   :  { %1777 = vst [vmem:[%s3953_s7 + $0x368] sm:$0xff] %v1422_v14  ;;  %1891 = vst.msk [vmem:[%s3953_s7 + $0x6f8] sm:$0xff] %vm1673_vm2, %v1664_v45 }
 0x370   :  { %1778 = vst [vmem:[%s3953_s7 + $0x370] sm:$0xff] %v1424_v8  ;;  %1877 = vst.msk [vmem:[%s3953_s7 + $0x688] sm:$0xff] %vm1673_vm2, %v1656_v37 }
 0x372   :  { %v1427_v46 = vpop.f32.mrb[112].mxu0 }
 0x373   :  { %v1428_v12 = vadd.f32 %v1427_v46, %v3516_v11  ;;  %v1429_v50 = vpop.f32.mrb[113].mxu0 }
 0x374   :  { %v1430_v51 = vadd.f32 %v1429_v50, %v3528_v13  ;;  %v1431_v52 = vpop.f32.mrb[114].mxu0 }
 0x375   :  { %1784 = vst [vmem:[%s3953_s7 + $0x3a0] sm:$0xff] %v1428_v12  ;;  %v1432_v4 = vadd.f32 %v1431_v52, %v3516_v11  ;;  %v1433_v53 = vpop.f32.mrb[115].mxu0 }
 0x376   :  { %1785 = vst [vmem:[%s3953_s7 + $0x3a8] sm:$0xff] %v1430_v51  ;;  %v1434_v54 = vadd.f32 %v1433_v53, %v3528_v13 }
 0x377   :  { %1791 = vst [vmem:[%s3953_s7 + $0x3d8] sm:$0xff] %v1432_v4 }
 0x378   :  { %1792 = vst [vmem:[%s3953_s7 + $0x3e0] sm:$0xff] %v1434_v54 }
 0x37a   :  { %v1437_v55 = vpop.f32.mrb[116].mxu0 }
 0x37b   :  { %v1438_v56 = vadd.f32 %v1437_v55, %v3516_v11  ;;  %v1439_v57 = vpop.f32.mrb[117].mxu0 }
 0x37c   :  { %v1440_v58 = vadd.f32 %v1439_v57, %v3528_v13  ;;  %v1441_v59 = vpop.f32.mrb[118].mxu0 }
 0x37d   :  { %1798 = vst [vmem:[%s3953_s7 + $0x410] sm:$0xff] %v1438_v56  ;;  %v1442_v60 = vadd.f32 %v1441_v59, %v3516_v11  ;;  %v1443_v61 = vpop.f32.mrb[119].mxu0 }
 0x37e   :  { %1799 = vst [vmem:[%s3953_s7 + $0x418] sm:$0xff] %v1440_v58  ;;  %v1444_v0 = vadd.f32 %v1443_v61, %v3528_v13 }
 0x37f   :  { %1805 = vst [vmem:[%s3953_s7 + $0x448] sm:$0xff] %v1442_v60 }
 0x380   :  { %1806 = vst [vmem:[%s3953_s7 + $0x450] sm:$0xff] %v1444_v0 }
 0x382   :  { %v1447_v3 = vpop.f32.mrb[120].mxu0 }
 0x383   :  { %v1448_v2 = vadd.f32 %v1447_v3, %v3516_v11  ;;  %v1449_v6 = vpop.f32.mrb[121].mxu0 }
 0x384   :  { %v1450_v7 = vadd.f32 %v1449_v6, %v3528_v13  ;;  %v1451_v26 = vpop.f32.mrb[122].mxu0 }
 0x385   :  { %1812 = vst [vmem:[%s3953_s7 + $0x480] sm:$0xff] %v1448_v2  ;;  %v1452_v47 = vadd.f32 %v1451_v26, %v3516_v11  ;;  %v1453_v48 = vpop.f32.mrb[123].mxu0 }
 0x386   :  { %1813 = vst [vmem:[%s3953_s7 + $0x488] sm:$0xff] %v1450_v7  ;;  %v1454_v5 = vadd.f32 %v1453_v48, %v3528_v13 }
 0x387   :  { %1819 = vst [vmem:[%s3953_s7 + $0x4b8] sm:$0xff] %v1452_v47 }
 0x388   :  { %1820 = vst [vmem:[%s3953_s7 + $0x4c0] sm:$0xff] %v1454_v5 }
 0x38a   :  { %v1457_v10 = vpop.f32.mrb[124].mxu0 }
 0x38b   :  { %v1458_v63 = vadd.f32 %v1457_v10, %v3516_v11  ;;  %v1459_v15 = vpop.f32.mrb[125].mxu0 }
 0x38c   :  { %v1460_v16 = vadd.f32 %v1459_v15, %v3528_v13  ;;  %v1461_v17 = vpop.f32.mrb[126].mxu0 }
 0x38d   :  { %1826 = vst [vmem:[%s3953_s7 + $0x4f0] sm:$0xff] %v1458_v63  ;;  %v1462_v18 = vadd.f32 %v1461_v17, %v3516_v11  ;;  %v1463_v19 = vpop.f32.mrb[127].mxu0 }
 0x38e   :  { %1827 = vst [vmem:[%s3953_s7 + $0x4f8] sm:$0xff] %v1460_v16  ;;  %v1464_v20 = vadd.f32 %v1463_v19, %v3528_v13 }
 0x38f   :  { %1833 = vst [vmem:[%s3953_s7 + $0x528] sm:$0xff] %v1462_v18 }
 0x390   :  { %1834 = vst [vmem:[%s3953_s7 + $0x530] sm:$0xff] %v1464_v20 }
 0x392   :  { %v1467_v21 = vpop.f32.mrb[128].mxu0 }
 0x393   :  { %v1468_v22 = vadd.f32 %v1467_v21, %v3516_v11  ;;  %v1469_v23 = vpop.f32.mrb[129].mxu0 }
 0x394   :  { %v1470_v24 = vadd.f32 %v1469_v23, %v3528_v13  ;;  %v1471_v25 = vpop.f32.mrb[130].mxu0 }
 0x395   :  { %1840 = vst [vmem:[%s3953_s7 + $0x560] sm:$0xff] %v1468_v22  ;;  %v1472_v28 = vadd.f32 %v1471_v25, %v3516_v11  ;;  %v1473_v29 = vpop.f32.mrb[131].mxu0 }
 0x396   :  { %1841 = vst [vmem:[%s3953_s7 + $0x568] sm:$0xff] %v1470_v24  ;;  %v1474_v30 = vadd.f32 %v1473_v29, %v3528_v13 }
 0x397   :  { %1847 = vst [vmem:[%s3953_s7 + $0x598] sm:$0xff] %v1472_v28 }
 0x398   :  { %1848 = vst [vmem:[%s3953_s7 + $0x5a0] sm:$0xff] %v1474_v30 }
 0x39a   :  { %v1477_v31 = vpop.f32.mrb[132].mxu0 }
 0x39b   :  { %v1478_v9 = vadd.f32 %v1477_v31, %v3516_v11  ;;  %v1479_v32 = vpop.f32.mrb[133].mxu0 }
 0x39c   :  { %v1480_v33 = vadd.f32 %v1479_v32, %v3528_v13  ;;  %v1481_v34 = vpop.f32.mrb[134].mxu0 }
 0x39d   :  { %1854 = vst [vmem:[%s3953_s7 + $0x5d0] sm:$0xff] %v1478_v9  ;;  %v1482_v1 = vadd.f32 %v1481_v34, %v3516_v11  ;;  %v1483_v35 = vpop.f32.mrb[135].mxu0 }
 0x39e   :  { %1855 = vst [vmem:[%s3953_s7 + $0x5d8] sm:$0xff] %v1480_v33  ;;  %v1484_v36 = vadd.f32 %v1483_v35, %v3528_v13 }
 0x39f   :  { %1861 = vst [vmem:[%s3953_s7 + $0x608] sm:$0xff] %v1482_v1 }
 0x3a0   :  { %1862 = vst [vmem:[%s3953_s7 + $0x610] sm:$0xff] %v1484_v36 }
 0x3a2   :  { %v1487_v62 = vpop.f32.mrb[136].mxu0 }
 0x3a3   :  { %v1488_v38 = vadd.f32 %v1487_v62, %v3516_v11  ;;  %v1489_v39 = vpop.f32.mrb[137].mxu0 }
 0x3a4   :  { %v1490_v40 = vadd.f32 %v1489_v39, %v3528_v13  ;;  %v1491_v41 = vpop.f32.mrb[138].mxu0 }
 0x3a5   :  { %1868 = vst [vmem:[%s3953_s7 + $0x640] sm:$0xff] %v1488_v38  ;;  %v1492_v43 = vadd.f32 %v1491_v41, %v3516_v11  ;;  %v1493_v27 = vpop.f32.mrb[139].mxu0 }
 0x3a6   :  { %1869 = vst [vmem:[%s3953_s7 + $0x648] sm:$0xff] %v1490_v40  ;;  %v1494_v44 = vadd.f32 %v1493_v27, %v3528_v13 }
 0x3a7   :  { %1875 = vst [vmem:[%s3953_s7 + $0x678] sm:$0xff] %v1492_v43 }
 0x3a8   :  { %1876 = vst [vmem:[%s3953_s7 + $0x680] sm:$0xff] %v1494_v44 }
 0x3aa   :  { %v1497_v14 = vpop.f32.mrb[140].mxu0 }
 0x3ab   :  { %v1498_v45 = vadd.f32 %v1497_v14, %v3516_v11  ;;  %v1499_v49 = vpop.f32.mrb[141].mxu0 }
 0x3ac   :  { %v1500_v42 = vadd.f32 %v1499_v49, %v3528_v13  ;;  %v1501_v8 = vpop.f32.mrb[142].mxu0 }
 0x3ad   :  { %1882 = vst [vmem:[%s3953_s7 + $0x6b0] sm:$0xff] %v1498_v45  ;;  %v1502_v37 = vadd.f32 %v1501_v8, %v3516_v11  ;;  %v1503_v46 = vpop.f32.mrb[143].mxu0 }
 0x3ae   :  { %1883 = vst [vmem:[%s3953_s7 + $0x6b8] sm:$0xff] %v1500_v42  ;;  %v1504_v12 = vadd.f32 %v1503_v46, %v3528_v13 }
 0x3af   :  { %1889 = vst [vmem:[%s3953_s7 + $0x6e8] sm:$0xff] %v1502_v37 }
 0x3b0   :  { %1890 = vst [vmem:[%s3953_s7 + $0x6f0] sm:$0xff] %v1504_v12 }

</bundles_post_ra>
